<compile_context>
chip_gen: v6e
topology: v6e:2x2x1
jax: 0.10.0
libtpu: 0.0.40
codegen_flags: <defaults>
</compile_context>

<pallas_src>
import functools

import jax
import jax.numpy as jnp
from jax import lax
from jax.experimental import pallas as pl
from jax.experimental.pallas import tpu as pltpu


# --------------------------------------------------------------------------
# Fused kernel: down_mlp (ReLU layers) + mean over L, then (on the last L
# tile) the commuted last linear layer + feature_mlp + fusion + task heads.
# --------------------------------------------------------------------------

def _apnet_kernel(*refs, n_relu, n_feat, head_nl, n_l, inv_l, seq_len,
                  tile_l, needs_mask, out_width):
    it = iter(refs)
    x_ref = next(it)                                        # (tb, tl, D) bf16
    relu_wb = [(next(it), next(it)) for _ in range(n_relu)]  # bf16 W, f32 b
    wL_ref = next(it)                                        # (Hk_pad, E) f32
    bL_ref = next(it)                                        # (1, E) f32
    feat_ref = next(it)                                      # (tb, F) f32
    feat_wb = [(next(it), next(it)) for _ in range(n_feat)]
    heads_wb = [[(next(it), next(it)) for _ in range(nl)] for nl in head_nl]
    out_ref = next(it)                                       # (tb, out_width)
    acc_ref = next(it)                                       # (tb, Hk_pad) f32

    l = pl.program_id(1)

    @pl.when(l == 0)
    def _init():
        acc_ref[...] = jnp.zeros_like(acc_ref)

    tb, tl, D = x_ref.shape
    x = x_ref[...]
    if needs_mask:
        # Ragged last tile: rows >= seq_len carry unspecified data.
        valid = (l * tile_l
                 + lax.broadcasted_iota(jnp.int32, (1, tl, 1), 1)) < seq_len
        x = jnp.where(valid, x, 0)

    # Flatten (tb, tl) rows into one slab so the MXU sees one big matmul.
    h = x.reshape(tb * tl, D)
    for (w_ref, b_ref) in relu_wb:
        # bf16 operands, f32 accumulation; bias add + ReLU stay in f32 (VPU).
        h = jnp.dot(h.astype(jnp.bfloat16), w_ref[...],
                    preferred_element_type=jnp.float32)
        h = jnp.maximum(h + b_ref[...], 0.0)

    h3 = h.reshape(tb, tl, -1).astype(jnp.float32)
    if needs_mask:
        # MLP of a zero-padded row is NOT zero (bias + ReLU): mask h itself.
        h3 = jnp.where(valid, h3, 0.0)
    acc_ref[...] += jnp.sum(h3, axis=1)

    @pl.when(l == n_l - 1)
    def _finalize():
        # mean over L (true length), then the activation-free last down_mlp
        # layer applied AFTER the mean (valid: mean(h@W+b) == mean(h)@W + b).
        mean_h = acc_ref[...] * inv_l
        emb = jnp.dot(mean_h, wL_ref[...],
                      preferred_element_type=jnp.float32) + bL_ref[...]

        # feature_mlp (ReLU between layers, none after the last).
        f = feat_ref[...].astype(jnp.float32)
        for i, (w_ref, b_ref) in enumerate(feat_wb):
            f = jnp.dot(f, w_ref[...],
                        preferred_element_type=jnp.float32) + b_ref[...]
            if i < n_feat - 1:
                f = jnp.maximum(f, 0.0)

        z = emb + emb * f

        # Task heads; pack latent + head outputs into one lane-dense slab.
        pieces = [z]
        for layers in heads_wb:
            y = z
            for i, (w_ref, b_ref) in enumerate(layers):
                y = jnp.dot(y, w_ref[...],
                            preferred_element_type=jnp.float32) + b_ref[...]
                if i < len(layers) - 1:
                    y = jnp.maximum(y, 0.0)
            pieces.append(y)
        packed = jnp.concatenate(pieces, axis=-1)
        pad = out_width - packed.shape[-1]
        if pad:
            packed = jnp.concatenate(
                [packed, jnp.zeros((packed.shape[0], pad), packed.dtype)],
                axis=-1)
        out_ref[...] = packed.astype(out_ref.dtype)


# --------------------------------------------------------------------------
# Wrapper-side preparation: dtype, hidden-width padding, tiling, VMEM budget.
# --------------------------------------------------------------------------

def _vmem_capacity():
    try:
        return int(pltpu.get_tpu_info().vmem_capacity_bytes)
    except Exception:
        return 64 << 20   # conservative default (v7x per-TensorCore VMEM)


def _prepare_down_mlp(down_layers, lane=128):
    """Split down_mlp into (padded bf16 ReLU layers, last linear layer).

    Hidden widths are zero-padded up to a multiple of `lane` so every MXU
    matmul is lane-dense; ReLU(0)=0 and zero-padded rows of the following
    weight keep the math identical to the unpadded MLP.
    """
    n = len(down_layers)
    relu_wb = []
    prev_pad_rows = None
    w_last = b_last = None
    for i, (w, b) in enumerate(down_layers):
        w = jnp.asarray(w, jnp.float32)
        b = jnp.asarray(b, jnp.float32)
        if prev_pad_rows is not None and w.shape[0] < prev_pad_rows:
            w = jnp.pad(w, ((0, prev_pad_rows - w.shape[0]), (0, 0)))
        if i < n - 1:
            pad = (-w.shape[1]) % lane
            if pad:
                w = jnp.pad(w, ((0, 0), (0, pad)))
                b = jnp.pad(b, ((0, pad),))
            prev_pad_rows = w.shape[1]
            relu_wb.append((w.astype(jnp.bfloat16), b.reshape(1, -1)))
        else:
            w_last, b_last = w, b.reshape(1, -1)
    return relu_wb, w_last, b_last


def _choose_b_tile(B):
    # A >1 batch-tile axis lets v7x megacore split work over its 2 TCs.
    if B >= 16 and B % 8 == 0:
        return 8
    return B


def _choose_l_tile(L, tb, D, relu_wb, hk_pad, resident_bytes, weight_buffers,
                   vmem_cap, max_l_tile):
    widths = [w.shape[1] for (w, _) in relu_wb] or [D]
    max_w = max([D] + widths)
    # Per (batch row, seq position): 2x bf16 token buffers + 2 live f32 slabs.
    per_row = 2 * D * 2 + 2 * max_w * 4
    fixed = weight_buffers * resident_bytes + tb * hk_pad * 4 + (4 << 20)
    budget = int(vmem_cap * 0.6) - fixed
    tile_l = budget // (per_row * tb) if budget > 0 else 8
    tile_l = int(min(tile_l, 2048))
    if max_l_tile is not None:
        tile_l = min(tile_l, int(max_l_tile))
    if tile_l >= L:
        return L, 1, False           # single full-extent L block, no masking
    tile_l = max(8, tile_l - (tile_l % 8))
    n_l = int(pl.cdiv(L, tile_l))
    return tile_l, n_l, (n_l * tile_l != L)


def _vmem_limit(vmem_cap, tb, tile_l, D, max_w, hk_pad, out_w, feat_dim,
                resident_bytes, weight_buffers):
    rows = tb * tile_l
    need = 2 * rows * D * 2                      # double-buffered bf16 tokens
    need += 2 * rows * max_w * 4                 # live f32 activation slabs
    need += weight_buffers * resident_bytes      # resident weights / biases
    need += tb * hk_pad * 4                      # accumulator scratch
    need += 2 * tb * out_w * 4 + 2 * tb * feat_dim * 4
    need = int(need * 1.5) + (4 << 20)           # compiler temps / headroom
    return int(min(vmem_cap * 0.9, max(need, 32 << 20)))


def _resident_spec(shape, single_buffer):
    index_map = lambda b, l: (0,) * len(shape)
    if single_buffer:
        # Constant-index weights: one buffer instead of the default two.
        return pl.BlockSpec(shape, index_map, pipeline_mode=pl.Buffered(1))
    return pl.BlockSpec(shape, index_map)


def _apnet_forward(params, tokens, features, *, max_l_tile,
                   single_buffer_weights):
    B, L, D = tokens.shape
    tokens_bf16 = tokens.astype(jnp.bfloat16)
    feats = features.astype(jnp.float32)
    F = feats.shape[1]

    relu_wb, w_last, b_last = _prepare_down_mlp(params["down_mlp"])
    hk_pad = relu_wb[-1][0].shape[1] if relu_wb else D
    E = w_last.shape[1]

    feat_wb = [(jnp.asarray(w, jnp.float32),
                jnp.asarray(b, jnp.float32).reshape(1, -1))
               for (w, b) in params["feature_mlp"]]
    head_names = list(params["task_heads"].keys())
    heads_wb = [[(jnp.asarray(w, jnp.float32),
                  jnp.asarray(b, jnp.float32).reshape(1, -1))
                 for (w, b) in params["task_heads"][k]] for k in head_names]
    head_widths = [hw[-1][0].shape[1] for hw in heads_wb]

    total_w = E + sum(head_widths)
    out_w = ((total_w + 127) // 128) * 128       # lane-dense packed output

    tail_arrays = [w_last, b_last]
    for (w, b) in feat_wb:
        tail_arrays += [w, b]
    for hw in heads_wb:
        for (w, b) in hw:
            tail_arrays += [w, b]
    resident_bytes = sum(x.size * x.dtype.itemsize for x in tail_arrays)
    resident_bytes += sum(w.size * w.dtype.itemsize + b.size * b.dtype.itemsize
                          for (w, b) in relu_wb)

    tb = _choose_b_tile(B)
    n_b = B // tb
    vmem_cap = _vmem_capacity()
    weight_buffers = 1 if single_buffer_weights else 2
    tile_l, n_l, needs_mask = _choose_l_tile(
        L, tb, D, relu_wb, hk_pad, resident_bytes, weight_buffers, vmem_cap,
        max_l_tile)
    widths = [w.shape[1] for (w, _) in relu_wb] or [D]
    vmem_limit = _vmem_limit(vmem_cap, tb, tile_l, D, max([D] + widths),
                             hk_pad, out_w, F, resident_bytes, weight_buffers)

    # ---- assemble inputs / specs (kernel unpack order must match) ----------
    inputs = [tokens_bf16]
    in_specs = [pl.BlockSpec((tb, tile_l, D), lambda b, l: (b, l, 0))]

    def add_resident(arr):
        inputs.append(arr)
        in_specs.append(_resident_spec(arr.shape, single_buffer_weights))

    for (w, b) in relu_wb:
        add_resident(w); add_resident(b)
    add_resident(w_last); add_resident(b_last)
    inputs.append(feats)
    in_specs.append(pl.BlockSpec((tb, F), lambda b, l: (b, 0)))
    for (w, b) in feat_wb:
        add_resident(w); add_resident(b)
    for hw in heads_wb:
        for (w, b) in hw:
            add_resident(w); add_resident(b)

    kernel = functools.partial(
        _apnet_kernel,
        n_relu=len(relu_wb),
        n_feat=len(feat_wb),
        head_nl=tuple(len(hw) for hw in heads_wb),
        n_l=n_l,
        inv_l=1.0 / L,
        seq_len=L,
        tile_l=tile_l,
        needs_mask=needs_mask,
        out_width=out_w)

    flops = 2 * B * L * sum(w.shape[0] * w.shape[1] for (w, _) in relu_wb)
    flops += 2 * B * (hk_pad * E
                      + sum(w.shape[0] * w.shape[1] for (w, _) in feat_wb)
                      + sum(w.shape[0] * w.shape[1]
                            for hw in heads_wb for (w, _) in hw))
    bytes_acc = (tokens_bf16.size * 2
                 + sum(x.size * x.dtype.itemsize for x in inputs[1:])
                 + B * out_w * 4)

    packed = pl.pallas_call(
        kernel,
        out_shape=jax.ShapeDtypeStruct((B, out_w), jnp.float32),
        grid=(n_b, n_l),
        in_specs=in_specs,
        out_specs=pl.BlockSpec((tb, out_w), lambda b, l: (b, 0)),
        scratch_shapes=[pltpu.VMEM((tb, hk_pad), jnp.float32)],
        compiler_params=pltpu.CompilerParams(
            dimension_semantics=("parallel", "arbitrary"),
            vmem_limit_bytes=vmem_limit),
        cost_estimate=pl.CostEstimate(flops=int(flops), transcendentals=0,
                                      bytes_accessed=int(bytes_acc)),
    )(*inputs)

    results = {"latent": packed[:, :E]}
    off = E
    for name, w in zip(head_names, head_widths):
        results[name] = packed[:, off:off + w]
        off += w
    return results


def apnet_forward(params, tokens, features, *, max_l_tile=None):
    try:
        return _apnet_forward(params, tokens, features, max_l_tile=max_l_tile,
                              single_buffer_weights=True)
    except Exception:
        # pl.Buffered(1) pipeline_mode not supported by this jax/libtpu build;
        # fall back to default double-buffered resident weights.
        return _apnet_forward(params, tokens, features, max_l_tile=max_l_tile,
                              single_buffer_weights=False)


# --------------------------------------------------------------------------
# Model glue + pure-jnp reference (mirrors the PyTorch forward).
# --------------------------------------------------------------------------

def init_mlp(key, hiddens):
    params = []
    for i in range(len(hiddens) - 1):
        key, kw, kb = jax.random.split(key, 3)
        w = jax.random.normal(kw, (hiddens[i], hiddens[i + 1]), jnp.float32)
        w = w / jnp.sqrt(jnp.float32(hiddens[i]))
        b = 0.01 * jax.random.normal(kb, (hiddens[i + 1],), jnp.float32)
        params.append((w, b))
    return params


def reference_forward(params, tokens, features):
    def mlp(ps, x):
        n = len(ps)
        for i, (w, b) in enumerate(ps):
            x = x @ w + b
            if i < n - 1:
                x = jnp.maximum(x, 0.0)
        return x

    B, L, D = tokens.shape
    emb = mlp(params["down_mlp"], tokens.reshape(B * L, D))
    emb = emb.reshape(B, L, -1).mean(axis=1)
    f = mlp(params["feature_mlp"], features)
    z = emb + emb * f
    out = {"latent": z}
    for k, hp in params["task_heads"].items():
        out[k] = mlp(hp, z)
    return out


# --------------------------------------------------------------------------
# Demo
# --------------------------------------------------------------------------

if __name__ == "__main__":
    B, L = 2, 12           # L deliberately NOT a multiple of the forced tile
    esm_dim = 64            # stand-in for the (frozen) ESM embedding dim
    embed_dim = 32
    feat_dim = 16

    key = jax.random.PRNGKey(0)
    k_tok, k_feat, k_down, k_fmlp, k_ha, k_hb = jax.random.split(key, 6)

    # tokens == precomputed embeddings (esm_model_name=None branch)
    tokens = jax.random.normal(k_tok, (B, L, esm_dim), jnp.float32)
    features = jax.random.normal(k_feat, (B, feat_dim), jnp.float32)

    params = {
        "down_mlp": init_mlp(k_down, [esm_dim, 48, embed_dim]),
        "feature_mlp": init_mlp(k_fmlp, [feat_dim, embed_dim]),
        "task_heads": {
            "task_a": init_mlp(k_ha, [embed_dim, 16, 4]),
            "task_b": init_mlp(k_hb, [embed_dim, 8]),
        },
    }

    # max_l_tile=8 forces two L tiles (12 = 8 + masked 4) so the multi-tile
    # accumulation and the ragged-last-tile masking path are exercised.
    results = apnet_forward(params, tokens, features, max_l_tile=8)
    results = jax.tree_util.tree_map(jax.block_until_ready, results)

    assert results["latent"].shape == (B, embed_dim)
    assert results["task_a"].shape == (B, 4)
    assert results["task_b"].shape == (B, 8)

    # Loose tolerance vs. the f32 reference (kernel-1 matmuls run in bf16).
    ref = reference_forward(params, tokens, features)
    for name in ("latent", "task_a", "task_b"):
        assert jnp.allclose(results[name], ref[name], rtol=5e-2, atol=5e-2), name

    print("KERNEL_OK")
</pallas_src>

<mosaic_0001>
module attributes {stable_mosaic.version = 11 : i64} {
  func.func @_apnet_kernel(%arg0: i32, %arg1: i32, %arg2: memref<2x8x64xbf16, #tpu.memory_space<vmem>>, %arg3: memref<64x128xbf16, #tpu.memory_space<vmem>>, %arg4: memref<1x128xf32, #tpu.memory_space<vmem>>, %arg5: memref<128x32xf32, #tpu.memory_space<vmem>>, %arg6: memref<1x32xf32, #tpu.memory_space<vmem>>, %arg7: memref<2x16xf32, #tpu.memory_space<vmem>>, %arg8: memref<16x32xf32, #tpu.memory_space<vmem>>, %arg9: memref<1x32xf32, #tpu.memory_space<vmem>>, %arg10: memref<32x16xf32, #tpu.memory_space<vmem>>, %arg11: memref<1x16xf32, #tpu.memory_space<vmem>>, %arg12: memref<16x4xf32, #tpu.memory_space<vmem>>, %arg13: memref<1x4xf32, #tpu.memory_space<vmem>>, %arg14: memref<32x8xf32, #tpu.memory_space<vmem>>, %arg15: memref<1x8xf32, #tpu.memory_space<vmem>>, %arg16: memref<2x128xf32, #tpu.memory_space<vmem>>, %arg17: memref<2x128xf32, #tpu.memory_space<vmem>>) attributes {dimension_semantics = [#tpu.dimension_semantics<parallel>, #tpu.dimension_semantics<arbitrary>], iteration_bounds = array<i64: 1, 2>, scalar_prefetch = 0 : i64, scratch_operands = 1 : i64, tpu.core_type = #tpu.core_type<tc>, window_params = [{transform_indices = @transform_0, window_bounds = array<i64: 2, 8, 64>}, {pipeline_mode = #tpu.pipeline_mode<synchronous>, transform_indices = @transform_1, window_bounds = array<i64: 64, 128>}, {pipeline_mode = #tpu.pipeline_mode<synchronous>, transform_indices = @transform_2, window_bounds = array<i64: 1, 128>}, {pipeline_mode = #tpu.pipeline_mode<synchronous>, transform_indices = @transform_3, window_bounds = array<i64: 128, 32>}, {pipeline_mode = #tpu.pipeline_mode<synchronous>, transform_indices = @transform_4, window_bounds = array<i64: 1, 32>}, {transform_indices = @transform_5, window_bounds = array<i64: 2, 16>}, {pipeline_mode = #tpu.pipeline_mode<synchronous>, transform_indices = @transform_6, window_bounds = array<i64: 16, 32>}, {pipeline_mode = #tpu.pipeline_mode<synchronous>, transform_indices = @transform_7, window_bounds = array<i64: 1, 32>}, {pipeline_mode = #tpu.pipeline_mode<synchronous>, transform_indices = @transform_8, window_bounds = array<i64: 32, 16>}, {pipeline_mode = #tpu.pipeline_mode<synchronous>, transform_indices = @transform_9, window_bounds = array<i64: 1, 16>}, {pipeline_mode = #tpu.pipeline_mode<synchronous>, transform_indices = @transform_10, window_bounds = array<i64: 16, 4>}, {pipeline_mode = #tpu.pipeline_mode<synchronous>, transform_indices = @transform_11, window_bounds = array<i64: 1, 4>}, {pipeline_mode = #tpu.pipeline_mode<synchronous>, transform_indices = @transform_12, window_bounds = array<i64: 32, 8>}, {pipeline_mode = #tpu.pipeline_mode<synchronous>, transform_indices = @transform_13, window_bounds = array<i64: 1, 8>}, {transform_indices = @transform_14, window_bounds = array<i64: 2, 128>}]} {
    %c0_i32 = arith.constant 0 : i32
    %0 = arith.cmpi eq, %arg1, %c0_i32 : i32
    %1 = arith.extui %0 : i1 to i32
    %c0_i32_0 = arith.constant 0 : i32
    %2 = arith.cmpi ne, %1, %c0_i32_0 : i32
    scf.if %2 {
      %cst_16 = arith.constant 0.000000e+00 : f32
      %35 = vector.broadcast %cst_16 : f32 to vector<2x128xf32>
      %c0_17 = arith.constant 0 : index
      %c0_18 = arith.constant 0 : index
      %36 = vector.load %arg17[%c0_17, %c0_18] : memref<2x128xf32, #tpu.memory_space<vmem>>, vector<2x128xf32>
      tpu.vector_store %arg17[%c0_17, %c0_18], %35 {strides = array<i32>} : memref<2x128xf32, #tpu.memory_space<vmem>>, vector<2x128xf32>,
    } else {
    }
    %c0 = arith.constant 0 : index
    %c0_1 = arith.constant 0 : index
    %c0_2 = arith.constant 0 : index
    %3 = vector.load %arg2[%c0, %c0_1, %c0_2] : memref<2x8x64xbf16, #tpu.memory_space<vmem>>, vector<2x8x64xbf16>
    %c8_i32 = arith.constant 8 : i32
    %4 = arith.muli %arg1, %c8_i32 : i32
    %5 = tpu.iota {dimensions = array<i32: 1>} : vector<1x8x1xi32>
    %6 = vector.broadcast %4 : i32 to vector<1x8x1xi32>
    %7 = arith.addi %6, %5 : vector<1x8x1xi32>
    %c12_i32 = arith.constant 12 : i32
    %8 = vector.broadcast %c12_i32 : i32 to vector<1x8x1xi32>
    %9 = arith.cmpi slt, %7, %8 : vector<1x8x1xi32>
    %c0_i32_3 = arith.constant 0 : i32
    %10 = arith.sitofp %c0_i32_3 : i32 to bf16
    %11 = vector.shape_cast %9 : vector<1x8x1xi1> to vector<1x8x1xi1>
    %12 = vector.broadcast %11 : vector<1x8x1xi1> to vector<2x8x64xi1>
    %13 = vector.broadcast %10 : bf16 to vector<2x8x64xbf16>
    %14 = arith.select %12, %3, %13 : vector<2x8x64xi1>, vector<2x8x64xbf16>
    %15 = vector.shape_cast %14 : vector<2x8x64xbf16> to vector<16x64xbf16>
    %c0_4 = arith.constant 0 : index
    %c0_5 = arith.constant 0 : index
    %16 = vector.load %arg3[%c0_4, %c0_5] : memref<64x128xbf16, #tpu.memory_space<vmem>>, vector<64x128xbf16>
    %cst = arith.constant dense<0.000000e+00> : vector<16x128xf32>
    %17 = tpu.matmul %15, %16, %cst {dimension_numbers = #tpu.dot_dimension_numbers<[1], [0], [0], [1], [0, 0, 1, 1], [], []>} : vector<16x64xbf16>, vector<64x128xbf16>, vector<16x128xf32> -> vector<16x128xf32>
    %c0_6 = arith.constant 0 : index
    %c0_7 = arith.constant 0 : index
    %18 = vector.load %arg4[%c0_6, %c0_7] : memref<1x128xf32, #tpu.memory_space<vmem>>, vector<1x128xf32>
    %19 = vector.broadcast %18 : vector<1x128xf32> to vector<16x128xf32>
    %20 = arith.addf %17, %19 : vector<16x128xf32>
    %cst_8 = arith.constant 0.000000e+00 : f32
    %21 = vector.broadcast %cst_8 : f32 to vector<16x128xf32>
    %22 = arith.maximumf %20, %21 : vector<16x128xf32>
    %23 = vector.shape_cast %22 : vector<16x128xf32> to vector<2x8x128xf32>
    %cst_9 = arith.constant 0.000000e+00 : f32
    %24 = vector.shape_cast %9 : vector<1x8x1xi1> to vector<1x8x1xi1>
    %25 = vector.broadcast %24 : vector<1x8x1xi1> to vector<2x8x128xi1>
    %26 = vector.broadcast %cst_9 : f32 to vector<2x8x128xf32>
    %27 = arith.select %25, %23, %26 : vector<2x8x128xi1>, vector<2x8x128xf32>
    %c0_10 = arith.constant 0 : index
    %c0_11 = arith.constant 0 : index
    %28 = vector.load %arg17[%c0_10, %c0_11] : memref<2x128xf32, #tpu.memory_space<vmem>>, vector<2x128xf32>
    %cst_12 = arith.constant dense<0.000000e+00> : vector<2x128xf32>
    %29 = vector.multi_reduction <add>, %27, %cst_12 [1] : vector<2x8x128xf32> to vector<2x128xf32>
    %30 = arith.addf %28, %29 : vector<2x128xf32>
    %c0_13 = arith.constant 0 : index
    %c0_14 = arith.constant 0 : index
    %31 = vector.load %arg17[%c0_13, %c0_14] : memref<2x128xf32, #tpu.memory_space<vmem>>, vector<2x128xf32>
    tpu.vector_store %arg17[%c0_13, %c0_14], %30 {strides = array<i32>} : memref<2x128xf32, #tpu.memory_space<vmem>>, vector<2x128xf32>,
    %c1_i32 = arith.constant 1 : i32
    %32 = arith.cmpi eq, %arg1, %c1_i32 : i32
    %33 = arith.extui %32 : i1 to i32
    %c0_i32_15 = arith.constant 0 : i32
    %34 = arith.cmpi ne, %33, %c0_i32_15 : i32
    scf.if %34 {
      %c0_16 = arith.constant 0 : index
      %c0_17 = arith.constant 0 : index
      %35 = vector.load %arg17[%c0_16, %c0_17] : memref<2x128xf32, #tpu.memory_space<vmem>>, vector<2x128xf32>
      %cst_18 = arith.constant 0.0833333358 : f32
      %36 = vector.broadcast %cst_18 : f32 to vector<2x128xf32>
      %37 = arith.mulf %35, %36 : vector<2x128xf32>
      %c0_19 = arith.constant 0 : index
      %c0_20 = arith.constant 0 : index
      %38 = vector.load %arg5[%c0_19, %c0_20] : memref<128x32xf32, #tpu.memory_space<vmem>>, vector<128x32xf32>
      %cst_21 = arith.constant dense<0.000000e+00> : vector<2x32xf32>
      %39 = tpu.matmul %37, %38, %cst_21 {dimension_numbers = #tpu.dot_dimension_numbers<[1], [0], [0], [1], [0, 0, 1, 1], [], []>} : vector<2x128xf32>, vector<128x32xf32>, vector<2x32xf32> -> vector<2x32xf32>
      %c0_22 = arith.constant 0 : index
      %c0_23 = arith.constant 0 : index
      %40 = vector.load %arg6[%c0_22, %c0_23] : memref<1x32xf32, #tpu.memory_space<vmem>>, vector<1x32xf32>
      %41 = vector.broadcast %40 : vector<1x32xf32> to vector<2x32xf32>
      %42 = arith.addf %39, %41 : vector<2x32xf32>
      %c0_24 = arith.constant 0 : index
      %c0_25 = arith.constant 0 : index
      %43 = vector.load %arg7[%c0_24, %c0_25] : memref<2x16xf32, #tpu.memory_space<vmem>>, vector<2x16xf32>
      %c0_26 = arith.constant 0 : index
      %c0_27 = arith.constant 0 : index
      %44 = vector.load %arg8[%c0_26, %c0_27] : memref<16x32xf32, #tpu.memory_space<vmem>>, vector<16x32xf32>
      %cst_28 = arith.constant dense<0.000000e+00> : vector<2x32xf32>
      %45 = tpu.matmul %43, %44, %cst_28 {dimension_numbers = #tpu.dot_dimension_numbers<[1], [0], [0], [1], [0, 0, 1, 1], [], []>} : vector<2x16xf32>, vector<16x32xf32>, vector<2x32xf32> -> vector<2x32xf32>
      %c0_29 = arith.constant 0 : index
      %c0_30 = arith.constant 0 : index
      %46 = vector.load %arg9[%c0_29, %c0_30] : memref<1x32xf32, #tpu.memory_space<vmem>>, vector<1x32xf32>
      %47 = vector.broadcast %46 : vector<1x32xf32> to vector<2x32xf32>
      %48 = arith.addf %45, %47 : vector<2x32xf32>
      %49 = arith.mulf %42, %48 : vector<2x32xf32>
      %50 = arith.addf %42, %49 : vector<2x32xf32>
      %c0_31 = arith.constant 0 : index
      %c0_32 = arith.constant 0 : index
      %51 = vector.load %arg10[%c0_31, %c0_32] : memref<32x16xf32, #tpu.memory_space<vmem>>, vector<32x16xf32>
      %cst_33 = arith.constant dense<0.000000e+00> : vector<2x16xf32>
      %52 = tpu.matmul %50, %51, %cst_33 {dimension_numbers = #tpu.dot_dimension_numbers<[1], [0], [0], [1], [0, 0, 1, 1], [], []>} : vector<2x32xf32>, vector<32x16xf32>, vector<2x16xf32> -> vector<2x16xf32>
      %c0_34 = arith.constant 0 : index
      %c0_35 = arith.constant 0 : index
      %53 = vector.load %arg11[%c0_34, %c0_35] : memref<1x16xf32, #tpu.memory_space<vmem>>, vector<1x16xf32>
      %54 = vector.broadcast %53 : vector<1x16xf32> to vector<2x16xf32>
      %55 = arith.addf %52, %54 : vector<2x16xf32>
      %cst_36 = arith.constant 0.000000e+00 : f32
      %56 = vector.broadcast %cst_36 : f32 to vector<2x16xf32>
      %57 = arith.maximumf %55, %56 : vector<2x16xf32>
      %c0_37 = arith.constant 0 : index
      %c0_38 = arith.constant 0 : index
      %58 = vector.load %arg12[%c0_37, %c0_38] : memref<16x4xf32, #tpu.memory_space<vmem>>, vector<16x4xf32>
      %cst_39 = arith.constant dense<0.000000e+00> : vector<2x4xf32>
      %59 = tpu.matmul %57, %58, %cst_39 {dimension_numbers = #tpu.dot_dimension_numbers<[1], [0], [0], [1], [0, 0, 1, 1], [], []>} : vector<2x16xf32>, vector<16x4xf32>, vector<2x4xf32> -> vector<2x4xf32>
      %c0_40 = arith.constant 0 : index
      %c0_41 = arith.constant 0 : index
      %60 = vector.load %arg13[%c0_40, %c0_41] : memref<1x4xf32, #tpu.memory_space<vmem>>, vector<1x4xf32>
      %61 = vector.broadcast %60 : vector<1x4xf32> to vector<2x4xf32>
      %62 = arith.addf %59, %61 : vector<2x4xf32>
      %c0_42 = arith.constant 0 : index
      %c0_43 = arith.constant 0 : index
      %63 = vector.load %arg14[%c0_42, %c0_43] : memref<32x8xf32, #tpu.memory_space<vmem>>, vector<32x8xf32>
      %cst_44 = arith.constant dense<0.000000e+00> : vector<2x8xf32>
      %64 = tpu.matmul %50, %63, %cst_44 {dimension_numbers = #tpu.dot_dimension_numbers<[1], [0], [0], [1], [0, 0, 1, 1], [], []>} : vector<2x32xf32>, vector<32x8xf32>, vector<2x8xf32> -> vector<2x8xf32>
      %c0_45 = arith.constant 0 : index
      %c0_46 = arith.constant 0 : index
      %65 = vector.load %arg15[%c0_45, %c0_46] : memref<1x8xf32, #tpu.memory_space<vmem>>, vector<1x8xf32>
      %66 = vector.broadcast %65 : vector<1x8xf32> to vector<2x8xf32>
      %67 = arith.addf %64, %66 : vector<2x8xf32>
      %68 = tpu.concatenate %50, %62, %67 in 1 : vector<2x32xf32>, vector<2x4xf32>, vector<2x8xf32> -> vector<2x44xf32>
      %cst_47 = arith.constant 0.000000e+00 : f32
      %69 = vector.broadcast %cst_47 : f32 to vector<2x84xf32>
      %70 = tpu.concatenate %68, %69 in 1 : vector<2x44xf32>, vector<2x84xf32> -> vector<2x128xf32>
      %c0_48 = arith.constant 0 : index
      %c0_49 = arith.constant 0 : index
      %71 = vector.load %arg16[%c0_48, %c0_49] : memref<2x128xf32, #tpu.memory_space<vmem>>, vector<2x128xf32>
      tpu.vector_store %arg16[%c0_48, %c0_49], %70 {strides = array<i32>} : memref<2x128xf32, #tpu.memory_space<vmem>>, vector<2x128xf32>,
    } else {
    }
    return
  }
  func.func @transform_0(%arg0: i32, %arg1: i32) -> (i32, i32, i32) {
    %c0_i32 = arith.constant 0 : i32
    %c0_i32_0 = arith.constant 0 : i32
    return %arg0, %arg1, %c0_i32 : i32, i32, i32
  }
  func.func @transform_1(%arg0: i32, %arg1: i32) -> (i32, i32) {
    %c0_i32 = arith.constant 0 : i32
    %c0_i32_0 = arith.constant 0 : i32
    %c0_i32_1 = arith.constant 0 : i32
    return %c0_i32, %c0_i32_0 : i32, i32
  }
  func.func @transform_2(%arg0: i32, %arg1: i32) -> (i32, i32) {
    %c0_i32 = arith.constant 0 : i32
    %c0_i32_0 = arith.constant 0 : i32
    %c0_i32_1 = arith.constant 0 : i32
    return %c0_i32, %c0_i32_0 : i32, i32
  }
  func.func @transform_3(%arg0: i32, %arg1: i32) -> (i32, i32) {
    %c0_i32 = arith.constant 0 : i32
    %c0_i32_0 = arith.constant 0 : i32
    %c0_i32_1 = arith.constant 0 : i32
    return %c0_i32, %c0_i32_0 : i32, i32
  }
  func.func @transform_4(%arg0: i32, %arg1: i32) -> (i32, i32) {
    %c0_i32 = arith.constant 0 : i32
    %c0_i32_0 = arith.constant 0 : i32
    %c0_i32_1 = arith.constant 0 : i32
    return %c0_i32, %c0_i32_0 : i32, i32
  }
  func.func @transform_5(%arg0: i32, %arg1: i32) -> (i32, i32) {
    %c0_i32 = arith.constant 0 : i32
    %c0_i32_0 = arith.constant 0 : i32
    return %arg0, %c0_i32 : i32, i32
  }
  func.func @transform_6(%arg0: i32, %arg1: i32) -> (i32, i32) {
    %c0_i32 = arith.constant 0 : i32
    %c0_i32_0 = arith.constant 0 : i32
    %c0_i32_1 = arith.constant 0 : i32
    return %c0_i32, %c0_i32_0 : i32, i32
  }
  func.func @transform_7(%arg0: i32, %arg1: i32) -> (i32, i32) {
    %c0_i32 = arith.constant 0 : i32
    %c0_i32_0 = arith.constant 0 : i32
    %c0_i32_1 = arith.constant 0 : i32
    return %c0_i32, %c0_i32_0 : i32, i32
  }
  func.func @transform_8(%arg0: i32, %arg1: i32) -> (i32, i32) {
    %c0_i32 = arith.constant 0 : i32
    %c0_i32_0 = arith.constant 0 : i32
    %c0_i32_1 = arith.constant 0 : i32
    return %c0_i32, %c0_i32_0 : i32, i32
  }
  func.func @transform_9(%arg0: i32, %arg1: i32) -> (i32, i32) {
    %c0_i32 = arith.constant 0 : i32
    %c0_i32_0 = arith.constant 0 : i32
    %c0_i32_1 = arith.constant 0 : i32
    return %c0_i32, %c0_i32_0 : i32, i32
  }
  func.func @transform_10(%arg0: i32, %arg1: i32) -> (i32, i32) {
    %c0_i32 = arith.constant 0 : i32
    %c0_i32_0 = arith.constant 0 : i32
    %c0_i32_1 = arith.constant 0 : i32
    return %c0_i32, %c0_i32_0 : i32, i32
  }
  func.func @transform_11(%arg0: i32, %arg1: i32) -> (i32, i32) {
    %c0_i32 = arith.constant 0 : i32
    %c0_i32_0 = arith.constant 0 : i32
    %c0_i32_1 = arith.constant 0 : i32
    return %c0_i32, %c0_i32_0 : i32, i32
  }
  func.func @transform_12(%arg0: i32, %arg1: i32) -> (i32, i32) {
    %c0_i32 = arith.constant 0 : i32
    %c0_i32_0 = arith.constant 0 : i32
    %c0_i32_1 = arith.constant 0 : i32
    return %c0_i32, %c0_i32_0 : i32, i32
  }
  func.func @transform_13(%arg0: i32, %arg1: i32) -> (i32, i32) {
    %c0_i32 = arith.constant 0 : i32
    %c0_i32_0 = arith.constant 0 : i32
    %c0_i32_1 = arith.constant 0 : i32
    return %c0_i32, %c0_i32_0 : i32, i32
  }
  func.func @transform_14(%arg0: i32, %arg1: i32) -> (i32, i32) {
    %c0_i32 = arith.constant 0 : i32
    %c0_i32_0 = arith.constant 0 : i32
    return %arg0, %c0_i32 : i32, i32
  }
}

module attributes {stable_mosaic.version = 11 : i64} {
  func.func @_apnet_kernel(%arg0: i32, %arg1: i32, %arg2: memref<2x8x64xbf16, #tpu.memory_space<vmem>>, %arg3: memref<64x128xbf16, #tpu.memory_space<vmem>>, %arg4: memref<1x128xf32, #tpu.memory_space<vmem>>, %arg5: memref<128x32xf32, #tpu.memory_space<vmem>>, %arg6: memref<1x32xf32, #tpu.memory_space<vmem>>, %arg7: memref<2x16xf32, #tpu.memory_space<vmem>>, %arg8: memref<16x32xf32, #tpu.memory_space<vmem>>, %arg9: memref<1x32xf32, #tpu.memory_space<vmem>>, %arg10: memref<32x16xf32, #tpu.memory_space<vmem>>, %arg11: memref<1x16xf32, #tpu.memory_space<vmem>>, %arg12: memref<16x4xf32, #tpu.memory_space<vmem>>, %arg13: memref<1x4xf32, #tpu.memory_space<vmem>>, %arg14: memref<32x8xf32, #tpu.memory_space<vmem>>, %arg15: memref<1x8xf32, #tpu.memory_space<vmem>>, %arg16: memref<2x128xf32, #tpu.memory_space<vmem>>, %arg17: memref<2x128xf32, #tpu.memory_space<vmem>>) attributes {dimension_semantics = [#tpu.dimension_semantics<parallel>, #tpu.dimension_semantics<arbitrary>], iteration_bounds = array<i64: 1, 2>, scalar_prefetch = 0 : i64, scratch_operands = 1 : i64, tpu.core_type = #tpu.core_type<tc>, window_params = [{transform_indices = @transform_0, window_bounds = array<i64: 2, 8, 64>}, {pipeline_mode = #tpu.pipeline_mode<synchronous>, transform_indices = @transform_1, window_bounds = array<i64: 64, 128>}, {pipeline_mode = #tpu.pipeline_mode<synchronous>, transform_indices = @transform_2, window_bounds = array<i64: 1, 128>}, {pipeline_mode = #tpu.pipeline_mode<synchronous>, transform_indices = @transform_3, window_bounds = array<i64: 128, 32>}, {pipeline_mode = #tpu.pipeline_mode<synchronous>, transform_indices = @transform_4, window_bounds = array<i64: 1, 32>}, {transform_indices = @transform_5, window_bounds = array<i64: 2, 16>}, {pipeline_mode = #tpu.pipeline_mode<synchronous>, transform_indices = @transform_6, window_bounds = array<i64: 16, 32>}, {pipeline_mode = #tpu.pipeline_mode<synchronous>, transform_indices = @transform_7, window_bounds = array<i64: 1, 32>}, {pipeline_mode = #tpu.pipeline_mode<synchronous>, transform_indices = @transform_8, window_bounds = array<i64: 32, 16>}, {pipeline_mode = #tpu.pipeline_mode<synchronous>, transform_indices = @transform_9, window_bounds = array<i64: 1, 16>}, {pipeline_mode = #tpu.pipeline_mode<synchronous>, transform_indices = @transform_10, window_bounds = array<i64: 16, 4>}, {pipeline_mode = #tpu.pipeline_mode<synchronous>, transform_indices = @transform_11, window_bounds = array<i64: 1, 4>}, {pipeline_mode = #tpu.pipeline_mode<synchronous>, transform_indices = @transform_12, window_bounds = array<i64: 32, 8>}, {pipeline_mode = #tpu.pipeline_mode<synchronous>, transform_indices = @transform_13, window_bounds = array<i64: 1, 8>}, {transform_indices = @transform_14, window_bounds = array<i64: 2, 128>}]} {
    %c0_i32 = arith.constant 0 : i32
    %0 = arith.cmpi eq, %arg1, %c0_i32 : i32
    %1 = arith.extui %0 : i1 to i32
    %c0_i32_0 = arith.constant 0 : i32
    %2 = arith.cmpi ne, %1, %c0_i32_0 : i32
    scf.if %2 {
      %cst_16 = arith.constant 0.000000e+00 : f32
      %35 = vector.broadcast %cst_16 : f32 to vector<2x128xf32>
      %c0_17 = arith.constant 0 : index
      %c0_18 = arith.constant 0 : index
      %36 = vector.load %arg17[%c0_17, %c0_18] : memref<2x128xf32, #tpu.memory_space<vmem>>, vector<2x128xf32>
      tpu.vector_store %arg17[%c0_17, %c0_18], %35 {strides = array<i32>} : memref<2x128xf32, #tpu.memory_space<vmem>>, vector<2x128xf32>,
    } else {
    }
    %c0 = arith.constant 0 : index
    %c0_1 = arith.constant 0 : index
    %c0_2 = arith.constant 0 : index
    %3 = vector.load %arg2[%c0, %c0_1, %c0_2] : memref<2x8x64xbf16, #tpu.memory_space<vmem>>, vector<2x8x64xbf16>
    %c8_i32 = arith.constant 8 : i32
    %4 = arith.muli %arg1, %c8_i32 : i32
    %5 = tpu.iota {dimensions = array<i32: 1>} : vector<1x8x1xi32>
    %6 = vector.broadcast %4 : i32 to vector<1x8x1xi32>
    %7 = arith.addi %6, %5 : vector<1x8x1xi32>
    %c12_i32 = arith.constant 12 : i32
    %8 = vector.broadcast %c12_i32 : i32 to vector<1x8x1xi32>
    %9 = arith.cmpi slt, %7, %8 : vector<1x8x1xi32>
    %c0_i32_3 = arith.constant 0 : i32
    %10 = arith.sitofp %c0_i32_3 : i32 to bf16
    %11 = vector.shape_cast %9 : vector<1x8x1xi1> to vector<1x8x1xi1>
    %12 = vector.broadcast %11 : vector<1x8x1xi1> to vector<2x8x64xi1>
    %13 = vector.broadcast %10 : bf16 to vector<2x8x64xbf16>
    %14 = arith.select %12, %3, %13 : vector<2x8x64xi1>, vector<2x8x64xbf16>
    %15 = vector.shape_cast %14 : vector<2x8x64xbf16> to vector<16x64xbf16>
    %c0_4 = arith.constant 0 : index
    %c0_5 = arith.constant 0 : index
    %16 = vector.load %arg3[%c0_4, %c0_5] : memref<64x128xbf16, #tpu.memory_space<vmem>>, vector<64x128xbf16>
    %cst = arith.constant dense<0.000000e+00> : vector<16x128xf32>
    %17 = tpu.matmul %15, %16, %cst {dimension_numbers = #tpu.dot_dimension_numbers<[1], [0], [0], [1], [0, 0, 1, 1], [], []>} : vector<16x64xbf16>, vector<64x128xbf16>, vector<16x128xf32> -> vector<16x128xf32>
    %c0_6 = arith.constant 0 : index
    %c0_7 = arith.constant 0 : index
    %18 = vector.load %arg4[%c0_6, %c0_7] : memref<1x128xf32, #tpu.memory_space<vmem>>, vector<1x128xf32>
    %19 = vector.broadcast %18 : vector<1x128xf32> to vector<16x128xf32>
    %20 = arith.addf %17, %19 : vector<16x128xf32>
    %cst_8 = arith.constant 0.000000e+00 : f32
    %21 = vector.broadcast %cst_8 : f32 to vector<16x128xf32>
    %22 = arith.maximumf %20, %21 : vector<16x128xf32>
    %23 = vector.shape_cast %22 : vector<16x128xf32> to vector<2x8x128xf32>
    %cst_9 = arith.constant 0.000000e+00 : f32
    %24 = vector.shape_cast %9 : vector<1x8x1xi1> to vector<1x8x1xi1>
    %25 = vector.broadcast %24 : vector<1x8x1xi1> to vector<2x8x128xi1>
    %26 = vector.broadcast %cst_9 : f32 to vector<2x8x128xf32>
    %27 = arith.select %25, %23, %26 : vector<2x8x128xi1>, vector<2x8x128xf32>
    %c0_10 = arith.constant 0 : index
    %c0_11 = arith.constant 0 : index
    %28 = vector.load %arg17[%c0_10, %c0_11] : memref<2x128xf32, #tpu.memory_space<vmem>>, vector<2x128xf32>
    %cst_12 = arith.constant dense<0.000000e+00> : vector<2x128xf32>
    %29 = vector.multi_reduction <add>, %27, %cst_12 [1] : vector<2x8x128xf32> to vector<2x128xf32>
    %30 = arith.addf %28, %29 : vector<2x128xf32>
    %c0_13 = arith.constant 0 : index
    %c0_14 = arith.constant 0 : index
    %31 = vector.load %arg17[%c0_13, %c0_14] : memref<2x128xf32, #tpu.memory_space<vmem>>, vector<2x128xf32>
    tpu.vector_store %arg17[%c0_13, %c0_14], %30 {strides = array<i32>} : memref<2x128xf32, #tpu.memory_space<vmem>>, vector<2x128xf32>,
    %c1_i32 = arith.constant 1 : i32
    %32 = arith.cmpi eq, %arg1, %c1_i32 : i32
    %33 = arith.extui %32 : i1 to i32
    %c0_i32_15 = arith.constant 0 : i32
    %34 = arith.cmpi ne, %33, %c0_i32_15 : i32
    scf.if %34 {
      %c0_16 = arith.constant 0 : index
      %c0_17 = arith.constant 0 : index
      %35 = vector.load %arg17[%c0_16, %c0_17] : memref<2x128xf32, #tpu.memory_space<vmem>>, vector<2x128xf32>
      %cst_18 = arith.constant 0.0833333358 : f32
      %36 = vector.broadcast %cst_18 : f32 to vector<2x128xf32>
      %37 = arith.mulf %35, %36 : vector<2x128xf32>
      %c0_19 = arith.constant 0 : index
      %c0_20 = arith.constant 0 : index
      %38 = vector.load %arg5[%c0_19, %c0_20] : memref<128x32xf32, #tpu.memory_space<vmem>>, vector<128x32xf32>
      %cst_21 = arith.constant dense<0.000000e+00> : vector<2x32xf32>
      %39 = tpu.matmul %37, %38, %cst_21 {dimension_numbers = #tpu.dot_dimension_numbers<[1], [0], [0], [1], [0, 0, 1, 1], [], []>} : vector<2x128xf32>, vector<128x32xf32>, vector<2x32xf32> -> vector<2x32xf32>
      %c0_22 = arith.constant 0 : index
      %c0_23 = arith.constant 0 : index
      %40 = vector.load %arg6[%c0_22, %c0_23] : memref<1x32xf32, #tpu.memory_space<vmem>>, vector<1x32xf32>
      %41 = vector.broadcast %40 : vector<1x32xf32> to vector<2x32xf32>
      %42 = arith.addf %39, %41 : vector<2x32xf32>
      %c0_24 = arith.constant 0 : index
      %c0_25 = arith.constant 0 : index
      %43 = vector.load %arg7[%c0_24, %c0_25] : memref<2x16xf32, #tpu.memory_space<vmem>>, vector<2x16xf32>
      %c0_26 = arith.constant 0 : index
      %c0_27 = arith.constant 0 : index
      %44 = vector.load %arg8[%c0_26, %c0_27] : memref<16x32xf32, #tpu.memory_space<vmem>>, vector<16x32xf32>
      %cst_28 = arith.constant dense<0.000000e+00> : vector<2x32xf32>
      %45 = tpu.matmul %43, %44, %cst_28 {dimension_numbers = #tpu.dot_dimension_numbers<[1], [0], [0], [1], [0, 0, 1, 1], [], []>} : vector<2x16xf32>, vector<16x32xf32>, vector<2x32xf32> -> vector<2x32xf32>
      %c0_29 = arith.constant 0 : index
      %c0_30 = arith.constant 0 : index
      %46 = vector.load %arg9[%c0_29, %c0_30] : memref<1x32xf32, #tpu.memory_space<vmem>>, vector<1x32xf32>
      %47 = vector.broadcast %46 : vector<1x32xf32> to vector<2x32xf32>
      %48 = arith.addf %45, %47 : vector<2x32xf32>
      %49 = arith.mulf %42, %48 : vector<2x32xf32>
      %50 = arith.addf %42, %49 : vector<2x32xf32>
      %c0_31 = arith.constant 0 : index
      %c0_32 = arith.constant 0 : index
      %51 = vector.load %arg10[%c0_31, %c0_32] : memref<32x16xf32, #tpu.memory_space<vmem>>, vector<32x16xf32>
      %cst_33 = arith.constant dense<0.000000e+00> : vector<2x16xf32>
      %52 = tpu.matmul %50, %51, %cst_33 {dimension_numbers = #tpu.dot_dimension_numbers<[1], [0], [0], [1], [0, 0, 1, 1], [], []>} : vector<2x32xf32>, vector<32x16xf32>, vector<2x16xf32> -> vector<2x16xf32>
      %c0_34 = arith.constant 0 : index
      %c0_35 = arith.constant 0 : index
      %53 = vector.load %arg11[%c0_34, %c0_35] : memref<1x16xf32, #tpu.memory_space<vmem>>, vector<1x16xf32>
      %54 = vector.broadcast %53 : vector<1x16xf32> to vector<2x16xf32>
      %55 = arith.addf %52, %54 : vector<2x16xf32>
      %cst_36 = arith.constant 0.000000e+00 : f32
      %56 = vector.broadcast %cst_36 : f32 to vector<2x16xf32>
      %57 = arith.maximumf %55, %56 : vector<2x16xf32>
      %c0_37 = arith.constant 0 : index
      %c0_38 = arith.constant 0 : index
      %58 = vector.load %arg12[%c0_37, %c0_38] : memref<16x4xf32, #tpu.memory_space<vmem>>, vector<16x4xf32>
      %cst_39 = arith.constant dense<0.000000e+00> : vector<2x4xf32>
      %59 = tpu.matmul %57, %58, %cst_39 {dimension_numbers = #tpu.dot_dimension_numbers<[1], [0], [0], [1], [0, 0, 1, 1], [], []>} : vector<2x16xf32>, vector<16x4xf32>, vector<2x4xf32> -> vector<2x4xf32>
      %c0_40 = arith.constant 0 : index
      %c0_41 = arith.constant 0 : index
      %60 = vector.load %arg13[%c0_40, %c0_41] : memref<1x4xf32, #tpu.memory_space<vmem>>, vector<1x4xf32>
      %61 = vector.broadcast %60 : vector<1x4xf32> to vector<2x4xf32>
      %62 = arith.addf %59, %61 : vector<2x4xf32>
      %c0_42 = arith.constant 0 : index
      %c0_43 = arith.constant 0 : index
      %63 = vector.load %arg14[%c0_42, %c0_43] : memref<32x8xf32, #tpu.memory_space<vmem>>, vector<32x8xf32>
      %cst_44 = arith.constant dense<0.000000e+00> : vector<2x8xf32>
      %64 = tpu.matmul %50, %63, %cst_44 {dimension_numbers = #tpu.dot_dimension_numbers<[1], [0], [0], [1], [0, 0, 1, 1], [], []>} : vector<2x32xf32>, vector<32x8xf32>, vector<2x8xf32> -> vector<2x8xf32>
      %c0_45 = arith.constant 0 : index
      %c0_46 = arith.constant 0 : index
      %65 = vector.load %arg15[%c0_45, %c0_46] : memref<1x8xf32, #tpu.memory_space<vmem>>, vector<1x8xf32>
      %66 = vector.broadcast %65 : vector<1x8xf32> to vector<2x8xf32>
      %67 = arith.addf %64, %66 : vector<2x8xf32>
      %68 = tpu.concatenate %50, %62, %67 in 1 : vector<2x32xf32>, vector<2x4xf32>, vector<2x8xf32> -> vector<2x44xf32>
      %cst_47 = arith.constant 0.000000e+00 : f32
      %69 = vector.broadcast %cst_47 : f32 to vector<2x84xf32>
      %70 = tpu.concatenate %68, %69 in 1 : vector<2x44xf32>, vector<2x84xf32> -> vector<2x128xf32>
      %c0_48 = arith.constant 0 : index
      %c0_49 = arith.constant 0 : index
      %71 = vector.load %arg16[%c0_48, %c0_49] : memref<2x128xf32, #tpu.memory_space<vmem>>, vector<2x128xf32>
      tpu.vector_store %arg16[%c0_48, %c0_49], %70 {strides = array<i32>} : memref<2x128xf32, #tpu.memory_space<vmem>>, vector<2x128xf32>,
    } else {
    }
    return
  }
  func.func @transform_0(%arg0: i32, %arg1: i32) -> (i32, i32, i32) {
    %c0_i32 = arith.constant 0 : i32
    %c0_i32_0 = arith.constant 0 : i32
    return %arg0, %arg1, %c0_i32 : i32, i32, i32
  }
  func.func @transform_1(%arg0: i32, %arg1: i32) -> (i32, i32) {
    %c0_i32 = arith.constant 0 : i32
    %c0_i32_0 = arith.constant 0 : i32
    %c0_i32_1 = arith.constant 0 : i32
    return %c0_i32, %c0_i32_0 : i32, i32
  }
  func.func @transform_2(%arg0: i32, %arg1: i32) -> (i32, i32) {
    %c0_i32 = arith.constant 0 : i32
    %c0_i32_0 = arith.constant 0 : i32
    %c0_i32_1 = arith.constant 0 : i32
    return %c0_i32, %c0_i32_0 : i32, i32
  }
  func.func @transform_3(%arg0: i32, %arg1: i32) -> (i32, i32) {
    %c0_i32 = arith.constant 0 : i32
    %c0_i32_0 = arith.constant 0 : i32
    %c0_i32_1 = arith.constant 0 : i32
    return %c0_i32, %c0_i32_0 : i32, i32
  }
  func.func @transform_4(%arg0: i32, %arg1: i32) -> (i32, i32) {
    %c0_i32 = arith.constant 0 : i32
    %c0_i32_0 = arith.constant 0 : i32
    %c0_i32_1 = arith.constant 0 : i32
    return %c0_i32, %c0_i32_0 : i32, i32
  }
  func.func @transform_5(%arg0: i32, %arg1: i32) -> (i32, i32) {
    %c0_i32 = arith.constant 0 : i32
    %c0_i32_0 = arith.constant 0 : i32
    return %arg0, %c0_i32 : i32, i32
  }
  func.func @transform_6(%arg0: i32, %arg1: i32) -> (i32, i32) {
    %c0_i32 = arith.constant 0 : i32
    %c0_i32_0 = arith.constant 0 : i32
    %c0_i32_1 = arith.constant 0 : i32
    return %c0_i32, %c0_i32_0 : i32, i32
  }
  func.func @transform_7(%arg0: i32, %arg1: i32) -> (i32, i32) {
    %c0_i32 = arith.constant 0 : i32
    %c0_i32_0 = arith.constant 0 : i32
    %c0_i32_1 = arith.constant 0 : i32
    return %c0_i32, %c0_i32_0 : i32, i32
  }
  func.func @transform_8(%arg0: i32, %arg1: i32) -> (i32, i32) {
    %c0_i32 = arith.constant 0 : i32
    %c0_i32_0 = arith.constant 0 : i32
    %c0_i32_1 = arith.constant 0 : i32
    return %c0_i32, %c0_i32_0 : i32, i32
  }
  func.func @transform_9(%arg0: i32, %arg1: i32) -> (i32, i32) {
    %c0_i32 = arith.constant 0 : i32
    %c0_i32_0 = arith.constant 0 : i32
    %c0_i32_1 = arith.constant 0 : i32
    return %c0_i32, %c0_i32_0 : i32, i32
  }
  func.func @transform_10(%arg0: i32, %arg1: i32) -> (i32, i32) {
    %c0_i32 = arith.constant 0 : i32
    %c0_i32_0 = arith.constant 0 : i32
    %c0_i32_1 = arith.constant 0 : i32
    return %c0_i32, %c0_i32_0 : i32, i32
  }
  func.func @transform_11(%arg0: i32, %arg1: i32) -> (i32, i32) {
    %c0_i32 = arith.constant 0 : i32
    %c0_i32_0 = arith.constant 0 : i32
    %c0_i32_1 = arith.constant 0 : i32
    return %c0_i32, %c0_i32_0 : i32, i32
  }
  func.func @transform_12(%arg0: i32, %arg1: i32) -> (i32, i32) {
    %c0_i32 = arith.constant 0 : i32
    %c0_i32_0 = arith.constant 0 : i32
    %c0_i32_1 = arith.constant 0 : i32
    return %c0_i32, %c0_i32_0 : i32, i32
  }
  func.func @transform_13(%arg0: i32, %arg1: i32) -> (i32, i32) {
    %c0_i32 = arith.constant 0 : i32
    %c0_i32_0 = arith.constant 0 : i32
    %c0_i32_1 = arith.constant 0 : i32
    return %c0_i32, %c0_i32_0 : i32, i32
  }
  func.func @transform_14(%arg0: i32, %arg1: i32) -> (i32, i32) {
    %c0_i32 = arith.constant 0 : i32
    %c0_i32_0 = arith.constant 0 : i32
    return %arg0, %c0_i32 : i32, i32
  }
}

</mosaic_0001>

<bundles_post_ra>
// kernel: tpu_custom_call.1
= control target key start
LH: loop header
LB: loop body
LE: loop exit
PB: predicated region body
PF: predicated region fallthrough
CT: control target
= control target key end

     0   :  { %19 = vsyncpa [#allocation5], 0  ;;  %s1564_s29 = smov 0   ;;  %s1566_s30 = smov 0   ;;  %s1810_s0 = inlined_call_operand.vmem [shape: bf16[2,12,64], index: 0, kind: input, shape index: {}]   ;;  %s1811_s1 = inlined_call_operand.vmem [shape: bf16[64,128], index: 1, kind: input, shape index: {}]   ;;  %s1812_s2 = inlined_call_operand.vmem [shape: f32[1,128], index: 2, kind: input, shape index: {}]   ;;  %s1813_s3 = inlined_call_operand.vmem [shape: f32[128,32], index: 3, kind: input, shape index: {}]   ;;  %s1814_s4 = inlined_call_operand.vmem [shape: f32[1,32], index: 4, kind: input, shape index: {}]   ;;  %s1815_s5 = inlined_call_operand.vmem [shape: f32[2,16], index: 5, kind: input, shape index: {}]   ;;  %s1816_s6 = inlined_call_operand.vmem [shape: f32[16,32], index: 6, kind: input, shape index: {}]   ;;  %s1817_s7 = inlined_call_operand.vmem [shape: f32[1,32], index: 7, kind: input, shape index: {}]   ;;  %s1818_s8 = inlined_call_operand.vmem [shape: f32[32,16], index: 8, kind: input, shape index: {}]   ;;  %s1819_s9 = inlined_call_operand.vmem [shape: f32[1,16], index: 9, kind: input, shape index: {}]   ;;  %s1820_s10 = inlined_call_operand.vmem [shape: f32[16,4], index: 10, kind: input, shape index: {}]   ;;  %s1821_s11 = inlined_call_operand.vmem [shape: f32[1,4], index: 11, kind: input, shape index: {}]   ;;  %s1822_s12 = inlined_call_operand.vmem [shape: f32[32,8], index: 12, kind: input, shape index: {}]   ;;  %s1823_s13 = inlined_call_operand.vmem [shape: f32[1,8], index: 13, kind: input, shape index: {}]   ;;  %s1824_s14 = inlined_call_operand.hbm [shape: f32[2,128], index: 14, kind: output, shape index: {}]  }
   0x1   :  { %s1568_s15 = smov 0   ;;  %s1570_s16 = smov 0  }
   0x2   :  { %s1572_s17 = smov 0  }
   0x3 LB: > { %s34_s19 = sadd.s32 1, %s1475_s16  ;;  %p53_p1 = scmp.ne.s32.totalorder %s1467_s30, %s1463_s29  ;;  %s1479_s17 = sphi %s1572_s17, %s25_s17   ;;  %s1475_s16 = sphi %s1570_s16, %s1830_s16   ;;  %s1471_s15 = sphi %s1568_s15, %s1829_s15   ;;  %s1467_s30 = sphi %s1566_s30, %s1828_s30   ;;  %s1463_s29 = sphi %s1564_s29, %s1827_s29  }
   0x4   : > { %p35_p0 = scmp.ge.s32.totalorder %s34_s19, 2  ;;  %p54_p2 = scmp.eq.s32.totalorder %s1479_s17, 0 }
   0x5   : > { %s46_s21 = sadd.s32 1, %s1467_s30  ;;  %p1206_p5 = scmp.ge.s32.totalorder %s1479_s17, 2 }
   0x6   : > { %s1832_s19 = smov (%p35_p0, %s34_s19), 0  ;;  %p55_p3 = por %p54_p2, %p53_p1 }
   0x7   : > { %s42_s20 = ssub.s32 %s1475_s16, %s1832_s19  ;;  %426 = sbr.rel (%p1206_p5) target bundleno = 17 (0x11), region = 68 }
   0x8   : > { %p44_p4 = scmp.eq.s32.totalorder %s42_s20, 0 }
   0xa   : > { %s1600_s22 = scalar_select %p44_p4, %s1467_s30, %s46_s21  }
   0xc   : > { %429 = sbr.rel (!%p55_p3) target bundleno = 17 (0x11), region = 72  ;;  %s431_s23 = sand.u32 (%p55_p3), 1, %s1467_s30  }
   0xd   : > { %s1208_s24 = sshll.u32 (%p55_p3), %s1475_s16, 2  ;;  %s1207_s25 = sshll.u32 (%p55_p3), %s431_s23, 3 }
   0xe   : > { %s438_s28 = scalar_lea.vmem (%p55_p3), %s1810_s0, %s1208_s24  ;;  %s433_s18 = scalar_lea.vmem (%p55_p3), [#allocation3], %s1207_s25 }
   0xf   : > { %v455_v0 = vld [vmem:[%s438_s28] sm:$0xf] (%p55_p3)  ;;  %v457_v1 = vld [vmem:[%s438_s28 + $0x8] sm:$0xf] (%p55_p3) }
  0x10   : > { %456 = vst [vmem:[%s433_s18] sm:$0xf] (%p55_p3), %v455_v0  ;;  %458 = vst [vmem:[%s433_s18 + $0x4] sm:$0xf] (%p55_p3), %v457_v1 }
  0x11 PF: > { %p1209_p6 = scmp.ge.s32.totalorder %s1479_s17, 1  ;;  %p485_p7 = scmp.lt.s32.totalorder %s1479_s17, 3 }
  0x13   : > { %p486_p8 = pnand %p1209_p6, %p485_p7 }
  0x14   : > { %s492_s20 = sand.u32 (!%p486_p8), 1, %s1463_s29   ;;  %p1211_p9 = scmp.ne.s32.totalorder (!%p486_p8), %s1471_s15, 0 }
  0x15   : > { %489 = sbr.rel (%p486_p8) target bundleno = 1033 (0x409), region = 113  ;;  %s1210_s21 = sshll.u32 (!%p486_p8), %s492_s20, 3 }
  0x16   : > { %s494_s23 = scalar_lea.vmem (!%p486_p8), [#allocation3], %s1210_s21 }
  0x1a   : > { %545 = sbr.rel (%p1211_p9) target bundleno = 33 (0x21), region = 121 }
  0x1f   : > { %v1481_v2 = vmov 0.0  }
  0x20   : > { %546 = vst [vmem:[#allocation2] sm:$0x3] %v1481_v2 }
  0x21 PF: > { %v1409_v3 = vld [vmem:[%s1811_s1 + $0x18] sm:$0xff]   ;;  %v550_v4 = vlaneseq  ;;  %v1482_v5 = vmov 0.0   ;;  %v1410_v6 = vld [vmem:[%s1811_s1 + $0x10] sm:$0xff]   ;;  %vm1483_vm0 = vmmov 0   ;;  %s1212_s29 = sshll.u32 %s1471_s15, 3  ;;  %v1411_v10 = vld [vmem:[%s1811_s1 + $0x8] sm:$0xff]  }
  0x22   : > { %1272 = vmatprep.subr.bf16.mxu0 %v1482_v5  ;;  %1280 = vmatprep.mubr.msk.bf16.mxu0 %vm1483_vm0, %v1482_v5  ;;  %v552_v8 = vstv %s1212_s29  ;;  %v547_v11 = vld [vmem:[%s494_s23] sm:$0xf]  ;;  %v548_v12 = vld [vmem:[%s494_s23 + $0x4] sm:$0xf]  ;;  %vm604_vm3 = vcmask 523264   ;;  %vm668_vm4 = vcmask 1041409  }
  0x23   : > { %1273 = vmatpush3.bf16.msra.mxu0 %v1409_v3  ;;  %v551_v7 = vshrl.u32 %v550_v4, 7  ;;  %v1412_v13 = vld [vmem:[%s1811_s1] sm:$0xff]   ;;  %p1220_p10 = scmp.ne.s32.totalorder %s1471_s15, 1 }
  0x24   : > { %1274 = vmatprep.subr.bf16.mxu0 %v1482_v5  ;;  %v1213_v17 = vld [vmem:[%s1812_s2] ss:$0 sm:$0xff]  ;;  %s1486_s23 = smov (!%p1220_p10), 32   ;;  %s1487_s29 = smov (!%p1220_p10), 36  }
  0x25   : > { %v553_v9 = vadd.s32 %v552_v8, %v551_v7 }
  0x27   : > { %1275 = vmatpush3.bf16.msra.mxu0 %v1410_v6  ;;  %vm554_vm1 = vcmp.lt.s32.totalorder %v553_v9, 12  ;;  %v653_v39 = vld [vmem:[#allocation2] sm:$0x3] }
  0x28   : > { %1276 = vmatprep.subr.bf16.mxu0 %v1482_v5  ;;  %vm557_vm2 = vmpackc.low %vm554_vm1, %vm554_vm1 }
  0x29   : > { %v558_v14 = vsel %vm557_vm2, %v547_v11, 0  ;;  %v559_v15 = vsel %vm557_vm2, %v548_v12, 0 }
  0x2a   : > { %v1214_v16 = vcombine.low %v558_v14, %v559_v15 }
  0x2b   : > { %1277 = vmatpush3.bf16.msra.mxu0 %v1411_v10 }
  0x2c   : > { %1278 = vmatprep.subr.bf16.mxu0 %v1482_v5 }
  0x2f   : > { %1279 = vmatpush3.bf16.msra.mxu0 %v1412_v13 }
  0x32   : > { %1281 = vmatmul.mubr.msk.bf16.vlgmr.msra.gmra.mxu0 %vm604_vm3, %v1214_v16 }
  0xf2   : > { %v642_v18 = vpop.f32.mrf.mxu0 }
  0xf3   : > { %v643_v19 = vadd.f32 %v1213_v17, %v642_v18 }
  0xf4   : > { %v1282_v20 = vpop.f32.mrf.mxu0 }
  0xf5   : > { %v649_v21 = vmax.f32 %v643_v19, 0.0 }
  0xf6   : > { %v645_v22 = vpop.f32.mrf.mxu0 }
  0xf7   : > { %v651_v23 = vsel %vm554_vm1, %v649_v21, 0.0  ;;  %v646_v24 = vadd.f32 %v1213_v17, %v645_v22 }
  0xf8   : > { %v654_v25 = vrot.slane %v651_v23, 4  ;;  %v1283_v26 = vpop.f32.mrf.mxu0 }
  0xf9   : > { %v650_v27 = vmax.f32 %v646_v24, 0.0 }
  0xfa   : > { %v655_v28 = vadd.f32 %v654_v25, %v651_v23 }
  0xfb   : > { %v652_v29 = vsel %vm554_vm1, %v650_v27, 0.0 }
  0xfc   : > { %v656_v30 = vrot.slane %v655_v28, 2  ;;  %v660_v31 = vrot.slane %v652_v29, 4 }
  0xfe   : > { %v657_v32 = vadd.f32 %v656_v30, %v655_v28  ;;  %v661_v33 = vadd.f32 %v660_v31, %v652_v29 }
 0x100   : > { %v662_v34 = vrot.slane %v661_v33, 2  ;;  %v658_v35 = vrot.slane %v657_v32, 1 }
 0x102   : > { %v663_v36 = vadd.f32 %v662_v34, %v661_v33  ;;  %v659_v38 = vadd.f32 %v658_v35, %v657_v32 }
 0x104   : > { %v664_v37 = vrot.slane %v663_v36, 1 }
 0x106   : > { %v665_v40 = vadd.f32 %v664_v37, %v663_v36 }
 0x107   : > { %676 = sbr.rel (%p1220_p10) target bundleno = 1018 (0x3fa), region = 125 }
 0x108   : > { %v669_v41 = vsel %vm668_vm4, %v665_v40, %v659_v38 }
 0x109   : > { %v671_v42 = vadd.f32 %v669_v41, %v653_v39 }
 0x10b   : > { %672 = vst [vmem:[#allocation2] sm:$0x3] %v671_v42 }
 0x10c   : > { %v694_v43 = vld [vmem:[%s1813_s3 + $0x78] sm:$0xff]  ;;  %v1484_v44 = vmov 0.0   ;;  %v693_v45 = vld [vmem:[%s1813_s3 + $0x70] sm:$0xff]  ;;  %vm1485_vm5 = vmmov 0   ;;  %v692_v46 = vld [vmem:[%s1813_s3 + $0x68] sm:$0xff]  ;;  %vm782_vm6 = vcmask 130048  }
 0x10d   : > { %1284 = vmatprep.subr.mxu0 %v1484_v44  ;;  %1319 = vmatprep.subr.mxu1 %v1484_v44  ;;  %v774_v47 = vld [vmem:[%s1816_s6 + $0x8] sm:$0xff]  ;;  %v691_v48 = vld [vmem:[%s1813_s3 + $0x60] sm:$0xff]  ;;  %v690_v51 = vld [vmem:[%s1813_s3 + $0x58] sm:$0xff]  ;;  %vm869_vm7 = vcmask 261120   ;;  %vm1116_vm8 = vcmask 293888   ;;  %vm1118_vm9 = vcmask 359424  }
 0x10e   : > { %1285 = vmatpush3.msra.mxu0 %v694_v43  ;;  %1323 = vmatprep.mubr.msk.f32.mxu1 %vm1485_vm5, %v1484_v44  ;;  %v773_v49 = vld [vmem:[%s1816_s6] sm:$0xff]  ;;  %v689_v52 = vld [vmem:[%s1813_s3 + $0x50] sm:$0xff]  ;;  %v688_v53 = vld [vmem:[%s1813_s3 + $0x48] sm:$0xff] }
 0x10f   : > { %1286 = vmatprep.subr.mxu0 %v1484_v44  ;;  %1316 = vmatprep.mubr.msk.f32.mxu0 %vm1485_vm5, %v1484_v44  ;;  %v772_v50 = vld [vmem:[%s1815_s5] sm:$0x3]  ;;  %v686_v55 = vld [vmem:[%s1813_s3 + $0x38] sm:$0xff]  ;;  %v685_v56 = vld [vmem:[%s1813_s3 + $0x30] sm:$0xff] }
 0x110   : > { %1287 = vmatpush3.msra.mxu0 %v693_v45  ;;  %1320 = vmatpush3.msra.mxu1 %v774_v47  ;;  %v687_v54 = vld [vmem:[%s1813_s3 + $0x40] sm:$0xff]  ;;  %v684_v57 = vld [vmem:[%s1813_s3 + $0x28] sm:$0xff]  ;;  %v682_v59 = vld [vmem:[%s1813_s3 + $0x18] sm:$0xff] }
 0x111   : > { %1288 = vmatprep.subr.mxu0 %v1484_v44  ;;  %1321 = vmatprep.subr.mxu1 %v1484_v44  ;;  %v683_v58 = vld [vmem:[%s1813_s3 + $0x20] sm:$0xff]  ;;  %v681_v60 = vld [vmem:[%s1813_s3 + $0x10] sm:$0xff]  ;;  %v680_v62 = vld [vmem:[%s1813_s3 + $0x8] sm:$0xff] }
 0x112   : > { %1289 = vmatpush3.msra.mxu0 %v692_v46  ;;  %1322 = vmatpush3.msra.mxu1 %v773_v49  ;;  %v677_v61 = vld [vmem:[#allocation2] sm:$0x3]  ;;  %v861_v1 = vld [vmem:[%s1818_s8 + $0x18] sm:$0xff]  ;;  %v860_v2 = vld [vmem:[%s1818_s8 + $0x10] sm:$0xff] }
 0x113   : > { %1290 = vmatprep.subr.mxu0 %v1484_v44  ;;  %1324 = vmatmul.mubr.msk.f32.vlgmr.msra.gmra.mxu1 %vm782_vm6, %v772_v50  ;;  %v679_v63 = vld [vmem:[%s1813_s3] sm:$0xff]  ;;  %v678_v0 = vmul.f32 0.083333336, %v677_v61  ;;  %v859_v3 = vld [vmem:[%s1818_s8 + $0x8] sm:$0xff]  ;;  %v1029_v22 = vld [vmem:[%s1822_s12 + $0x18] sm:$0xff] }
 0x114   : > { %1291 = vmatpush3.msra.mxu0 %v691_v48  ;;  %1326 = vmatprep.subr.mxu1 %v1484_v44  ;;  %v858_v4 = vld [vmem:[%s1818_s8] sm:$0xff]  ;;  %v945_v15 = vld [vmem:[%s1820_s10 + $0x8] sm:$0xff]  ;;  %v1028_v23 = vld [vmem:[%s1822_s12 + $0x10] sm:$0xff] }
 0x115   : > { %1292 = vmatprep.subr.mxu0 %v1484_v44  ;;  %1334 = vmatprep.mubr.msk.f32.mxu1 %vm1485_vm5, %v1484_v44  ;;  %v1222_v7 = vld [vmem:[%s1817_s7] ss:$0 sm:$0xff]  ;;  %v1027_v24 = vld [vmem:[%s1822_s12 + $0x8] sm:$0xff] }
 0x116   : > { %1293 = vmatpush3.msra.mxu0 %v690_v51  ;;  %1327 = vmatpush3.msra.mxu1 %v861_v1  ;;  %v1221_v8 = vld [vmem:[%s1814_s4] ss:$0 sm:$0xff] }
 0x117   : > { %1294 = vmatprep.subr.mxu0 %v1484_v44  ;;  %1328 = vmatprep.subr.mxu1 %v1484_v44  ;;  %v944_v16 = vld [vmem:[%s1820_s10] sm:$0xff] }
 0x118   : > { %1295 = vmatpush3.msra.mxu0 %v689_v52  ;;  %1329 = vmatpush3.msra.mxu1 %v860_v2  ;;  %v1224_v17 = vld [vmem:[%s1819_s9] ss:$0 sm:$0xff] }
 0x119   : > { %1296 = vmatprep.subr.mxu0 %v1484_v44  ;;  %1330 = vmatprep.subr.mxu1 %v1484_v44  ;;  %v1026_v25 = vld [vmem:[%s1822_s12] sm:$0xff] }
 0x11a   : > { %1297 = vmatpush3.msra.mxu0 %v688_v53  ;;  %1331 = vmatpush3.msra.mxu1 %v859_v3  ;;  %v1226_v26 = vld [vmem:[%s1821_s11] ss:$0 sm:$0xff] }
 0x11b   : > { %1298 = vmatprep.subr.mxu0 %v1484_v44  ;;  %1332 = vmatprep.subr.mxu1 %v1484_v44  ;;  %v1228_v30 = vld [vmem:[%s1823_s13] ss:$0 sm:$0xff] }
 0x11c   : > { %1299 = vmatpush3.msra.mxu0 %v687_v54  ;;  %1333 = vmatpush3.msra.mxu1 %v858_v4 }
 0x11d   : > { %1300 = vmatprep.subr.mxu0 %v1484_v44  ;;  %1337 = vmatprep.subr.mxu1 %v1484_v44 }
 0x11e   : > { %1301 = vmatpush3.msra.mxu0 %v686_v55 }
 0x11f   : > { %1302 = vmatprep.subr.mxu0 %v1484_v44 }
 0x120   : > { %1303 = vmatpush3.msra.mxu0 %v685_v56 }
 0x121   : > { %1304 = vmatprep.subr.mxu0 %v1484_v44 }
 0x122   : > { %1305 = vmatpush3.msra.mxu0 %v684_v57 }
 0x123   : > { %1306 = vmatprep.subr.mxu0 %v1484_v44 }
 0x124   : > { %1307 = vmatpush3.msra.mxu0 %v683_v58 }
 0x125   : > { %1308 = vmatprep.subr.mxu0 %v1484_v44 }
 0x126   : > { %1309 = vmatpush3.msra.mxu0 %v682_v59 }
 0x127   : > { %1310 = vmatprep.subr.mxu0 %v1484_v44 }
 0x128   : > { %1311 = vmatpush3.msra.mxu0 %v681_v60 }
 0x129   : > { %1312 = vmatprep.subr.mxu0 %v1484_v44 }
 0x12a   : > { %1313 = vmatpush3.msra.mxu0 %v680_v62 }
 0x12b   : > { %1314 = vmatprep.subr.mxu0 %v1484_v44 }
 0x12c   : > { %1315 = vmatpush3.msra.mxu0 %v679_v63 }
 0x12d   : > { %1317 = vmatmul.mubr.f32.vlgmr.msra.gmra.mxu0 %v678_v0 }
 0x1d3   : > { %v852_v5 = vpop.f32.mrf.mxu1 }
 0x1d4   : > { %v853_v9 = vadd.f32 %v1222_v7, %v852_v5 }
 0x1d5   : > { %v1325_v6 = vpop.f32.mrf.mxu1 }
 0x1ed   : > { %v768_v10 = vpop.f32.mrf.mxu0 }
 0x1ee   : > { %v769_v11 = vadd.f32 %v1221_v8, %v768_v10 }
 0x1ef   : > { %v1318_v12 = vpop.f32.mrf.mxu0 }
 0x1f0   : > { %v856_v13 = vmul.f32 %v853_v9, %v769_v11 }
 0x1f2   : > { %v857_v14 = vadd.f32 %v856_v13, %v769_v11 }
 0x1f4   : > { %1335 = vmatmul.mubr.msk.f32.vlgmr.msra.gmra.mxu1 %vm869_vm7, %v857_v14 }
 0x1f5   : > { %1341 = vmatprep.mubr.msk.f32.mxu1 %vm1485_vm5, %v1484_v44  ;;  %1338 = vmatpush3.msra.mxu1 %v945_v15 }
 0x1f6   : > { %1339 = vmatprep.subr.mxu1 %v1484_v44 }
 0x1f7   : > { %1340 = vmatpush3.msra.mxu1 %v944_v16 }
 0x1f8   : > { %1344 = vmatprep.subr.mxu1 %v1484_v44 }
 0x2b4   : > { %v939_v18 = vpop.f32.mrf.mxu1 }
 0x2b5   : > { %v940_v19 = vadd.f32 %v1224_v17, %v939_v18 }
 0x2b6   : > { %v1336_v20 = vpop.f32.mrf.mxu1 }
 0x2b7   : > { %v943_v21 = vmax.f32 %v940_v19, 0.0 }
 0x2b9   : > { %1342 = vmatmul.mubr.msk.f32.vlgmr.msra.gmra.mxu1 %vm782_vm6, %v943_v21 }
 0x2ba   : > { %1345 = vmatpush3.msra.mxu1 %v1029_v22  ;;  %1352 = vmatprep.mubr.msk.f32.mxu1 %vm1485_vm5, %v1484_v44 }
 0x2bb   : > { %1346 = vmatprep.subr.mxu1 %v1484_v44 }
 0x2bc   : > { %1347 = vmatpush3.msra.mxu1 %v1028_v23 }
 0x2bd   : > { %1348 = vmatprep.subr.mxu1 %v1484_v44 }
 0x2be   : > { %1349 = vmatpush3.msra.mxu1 %v1027_v24 }
 0x2bf   : > { %1350 = vmatprep.subr.mxu1 %v1484_v44 }
 0x2c0   : > { %1351 = vmatpush3.msra.mxu1 %v1026_v25 }
 0x2c1   : > { %1353 = vmatmul.mubr.msk.f32.vlgmr.msra.gmra.mxu1 %vm869_vm7, %v857_v14 }
 0x379   : > { %v1022_v27 = vpop.f32.mrf.mxu1 }
 0x37a   : > { %v1023_v28 = vadd.f32 %v1226_v26, %v1022_v27 }
 0x37b   : > { %v1343_v29 = vpop.f32.mrf.mxu1 }
 0x37c   : > { %1108 = vrot.lane.b32.xlu0 %v1023_v28, %s1486_s23 }
 0x381   : > { %v1103_v31 = vpop.f32.mrf.mxu1 }
 0x382   : > { %v1104_v32 = vadd.f32 %v1228_v30, %v1103_v31 }
 0x383   : > { %v1354_v33 = vpop.f32.mrf.mxu1 }
 0x384   : > { %1112 = vrot.lane.b32.xlu0 %v1104_v32, %s1487_s29 }
 0x3ee   : > { %v1109_v34 = vpop.permute.xlu0 %1108 }
 0x3ef   : > { %v1115_v35 = vsel %vm869_vm7, %v857_v14, %v1109_v34 }
 0x3f6   : > { %v1113_v36 = vpop.permute.xlu0 %1112 }
 0x3f7   : > { %v1117_v37 = vsel %vm1116_vm8, %v1115_v35, %v1113_v36 }
 0x3f8   : > { %v1119_v38 = vsel %vm1118_vm9, %v1117_v37, 0.0 }
 0x3f9   : > { %1120 = vst [vmem:[#allocation4] sm:$0x3] %v1119_v38 }
 0x3fa PF: > { %s1825_s15 = sadd.s32 4294967295, %s1479_s17   ;;  %s1488_s28 = smov [#allocation4]  }
 0x3fb   : > { %p1780_p11 = scmp.eq.s32.totalorder %s1825_s15, 1  ;;  %s1130_s20 = sshll.u32 %s1488_s28, 4  ;;  %s1131_s20 = int_to_ptr.vmem [resolvable:$true] %s1130_s20 }
 0x3fc   : > { %s1413_s21 = scalar_lea.vmem %s1131_s20, 32  ;;  %p1420_p1 = scmp.lt.s32.totalorder %s1131_s20, %s1131_s20 }
 0x3fd   : > { %p1414_p12 = scmp.ne.s32.totalorder %s1131_s20, %s1413_s21  ;;  %p1421_p2 = scmp.lt.s32.totalorder %s1413_s21, %s1413_s21 }
 0x3ff   : > { %p1415_p13 = pnand %p1414_p12, %p1780_p11  ;;  %p1422_p3 = por %p1421_p2, %p1420_p1 }
 0x401   : > { %p1416_p0 = pneg %p1415_p13 }
 0x403   : > { %p1423_p4 = pnand %p1422_p3, %p1416_p0 }
 0x405   : > { %1426 = shalt.err (!%p1423_p4)
}
 0x406   : > { %1356 = dma.vmem_to_hbm [thread:$0]  (%p1780_p11), %s1131_s20, 32, %s1824_s14, [#allocation5]  }
 0x407   : > { %1458 = dma.done.wait (%p1780_p11), [#allocation5], 32  }
 0x408   : > { %1460 = vsyncadd (%p1780_p11), [#allocation5], 4294967264 }
 0x409 PF: > { %s25_s17 = sadd.s32 1, %s1479_s17   ;;  %s1827_s29 = smov %s1467_s30 }
 0x40a   : > { %p22_p5 = scmp.ge.s32.totalorder %s25_s17, 4   ;;  %s1828_s30 = smov %s1600_s22 }
 0x40b   : > { %s1829_s15 = smov %s1475_s16  ;;  %s1830_s16 = smov %s1832_s19 }
 0x40c   :  { %24 = sbr.rel (!%p22_p5) target bundleno = 3 (0x3), region = 161 }
 0x411   :  { %1143 = vsyncpa [#allocation5], 1 }
 0x412   :  { %1145 = vsyncpa [#allocation5 + $0x1], 1 }

// kernel: tpu_custom_call.1
= control target key start
LH: loop header
LB: loop body
LE: loop exit
PB: predicated region body
PF: predicated region fallthrough
CT: control target
= control target key end

     0   :  { %19 = vsyncpa [#allocation5], 0  ;;  %s1564_s29 = smov 0   ;;  %s1566_s30 = smov 0   ;;  %s1810_s0 = inlined_call_operand.vmem [shape: bf16[2,12,64], index: 0, kind: input, shape index: {}]   ;;  %s1811_s1 = inlined_call_operand.vmem [shape: bf16[64,128], index: 1, kind: input, shape index: {}]   ;;  %s1812_s2 = inlined_call_operand.vmem [shape: f32[1,128], index: 2, kind: input, shape index: {}]   ;;  %s1813_s3 = inlined_call_operand.vmem [shape: f32[128,32], index: 3, kind: input, shape index: {}]   ;;  %s1814_s4 = inlined_call_operand.vmem [shape: f32[1,32], index: 4, kind: input, shape index: {}]   ;;  %s1815_s5 = inlined_call_operand.vmem [shape: f32[2,16], index: 5, kind: input, shape index: {}]   ;;  %s1816_s6 = inlined_call_operand.vmem [shape: f32[16,32], index: 6, kind: input, shape index: {}]   ;;  %s1817_s7 = inlined_call_operand.vmem [shape: f32[1,32], index: 7, kind: input, shape index: {}]   ;;  %s1818_s8 = inlined_call_operand.vmem [shape: f32[32,16], index: 8, kind: input, shape index: {}]   ;;  %s1819_s9 = inlined_call_operand.vmem [shape: f32[1,16], index: 9, kind: input, shape index: {}]   ;;  %s1820_s10 = inlined_call_operand.vmem [shape: f32[16,4], index: 10, kind: input, shape index: {}]   ;;  %s1821_s11 = inlined_call_operand.vmem [shape: f32[1,4], index: 11, kind: input, shape index: {}]   ;;  %s1822_s12 = inlined_call_operand.vmem [shape: f32[32,8], index: 12, kind: input, shape index: {}]   ;;  %s1823_s13 = inlined_call_operand.vmem [shape: f32[1,8], index: 13, kind: input, shape index: {}]   ;;  %s1824_s14 = inlined_call_operand.hbm [shape: f32[2,128], index: 14, kind: output, shape index: {}]  }
   0x1   :  { %s1568_s15 = smov 0   ;;  %s1570_s16 = smov 0  }
   0x2   :  { %s1572_s17 = smov 0  }
   0x3 LB: > { %s34_s19 = sadd.s32 1, %s1475_s16  ;;  %p53_p1 = scmp.ne.s32.totalorder %s1467_s30, %s1463_s29  ;;  %s1479_s17 = sphi %s1572_s17, %s25_s17   ;;  %s1475_s16 = sphi %s1570_s16, %s1830_s16   ;;  %s1471_s15 = sphi %s1568_s15, %s1829_s15   ;;  %s1467_s30 = sphi %s1566_s30, %s1828_s30   ;;  %s1463_s29 = sphi %s1564_s29, %s1827_s29  }
   0x4   : > { %p35_p0 = scmp.ge.s32.totalorder %s34_s19, 2  ;;  %p54_p2 = scmp.eq.s32.totalorder %s1479_s17, 0 }
   0x5   : > { %s46_s21 = sadd.s32 1, %s1467_s30  ;;  %p1206_p5 = scmp.ge.s32.totalorder %s1479_s17, 2 }
   0x6   : > { %s1832_s19 = smov (%p35_p0, %s34_s19), 0  ;;  %p55_p3 = por %p54_p2, %p53_p1 }
   0x7   : > { %s42_s20 = ssub.s32 %s1475_s16, %s1832_s19  ;;  %426 = sbr.rel (%p1206_p5) target bundleno = 17 (0x11), region = 68 }
   0x8   : > { %p44_p4 = scmp.eq.s32.totalorder %s42_s20, 0 }
   0xa   : > { %s1600_s22 = scalar_select %p44_p4, %s1467_s30, %s46_s21  }
   0xc   : > { %429 = sbr.rel (!%p55_p3) target bundleno = 17 (0x11), region = 72  ;;  %s431_s23 = sand.u32 (%p55_p3), 1, %s1467_s30  }
   0xd   : > { %s1208_s24 = sshll.u32 (%p55_p3), %s1475_s16, 2  ;;  %s1207_s25 = sshll.u32 (%p55_p3), %s431_s23, 3 }
   0xe   : > { %s438_s28 = scalar_lea.vmem (%p55_p3), %s1810_s0, %s1208_s24  ;;  %s433_s18 = scalar_lea.vmem (%p55_p3), [#allocation3], %s1207_s25 }
   0xf   : > { %v455_v0 = vld [vmem:[%s438_s28] sm:$0xf] (%p55_p3)  ;;  %v457_v1 = vld [vmem:[%s438_s28 + $0x8] sm:$0xf] (%p55_p3) }
  0x10   : > { %456 = vst [vmem:[%s433_s18] sm:$0xf] (%p55_p3), %v455_v0  ;;  %458 = vst [vmem:[%s433_s18 + $0x4] sm:$0xf] (%p55_p3), %v457_v1 }
  0x11 PF: > { %p1209_p6 = scmp.ge.s32.totalorder %s1479_s17, 1  ;;  %p485_p7 = scmp.lt.s32.totalorder %s1479_s17, 3 }
  0x13   : > { %p486_p8 = pnand %p1209_p6, %p485_p7 }
  0x14   : > { %s492_s20 = sand.u32 (!%p486_p8), 1, %s1463_s29   ;;  %p1211_p9 = scmp.ne.s32.totalorder (!%p486_p8), %s1471_s15, 0 }
  0x15   : > { %489 = sbr.rel (%p486_p8) target bundleno = 1033 (0x409), region = 113  ;;  %s1210_s21 = sshll.u32 (!%p486_p8), %s492_s20, 3 }
  0x16   : > { %s494_s23 = scalar_lea.vmem (!%p486_p8), [#allocation3], %s1210_s21 }
  0x1a   : > { %545 = sbr.rel (%p1211_p9) target bundleno = 33 (0x21), region = 121 }
  0x1f   : > { %v1481_v2 = vmov 0.0  }
  0x20   : > { %546 = vst [vmem:[#allocation2] sm:$0x3] %v1481_v2 }
  0x21 PF: > { %v1409_v3 = vld [vmem:[%s1811_s1 + $0x18] sm:$0xff]   ;;  %v550_v4 = vlaneseq  ;;  %v1482_v5 = vmov 0.0   ;;  %v1410_v6 = vld [vmem:[%s1811_s1 + $0x10] sm:$0xff]   ;;  %vm1483_vm0 = vmmov 0   ;;  %s1212_s29 = sshll.u32 %s1471_s15, 3  ;;  %v1411_v10 = vld [vmem:[%s1811_s1 + $0x8] sm:$0xff]  }
  0x22   : > { %1272 = vmatprep.subr.bf16.mxu0 %v1482_v5  ;;  %1280 = vmatprep.mubr.msk.bf16.mxu0 %vm1483_vm0, %v1482_v5  ;;  %v552_v8 = vstv %s1212_s29  ;;  %v547_v11 = vld [vmem:[%s494_s23] sm:$0xf]  ;;  %v548_v12 = vld [vmem:[%s494_s23 + $0x4] sm:$0xf]  ;;  %vm604_vm3 = vcmask 523264   ;;  %vm668_vm4 = vcmask 1041409  }
  0x23   : > { %1273 = vmatpush3.bf16.msra.mxu0 %v1409_v3  ;;  %v551_v7 = vshrl.u32 %v550_v4, 7  ;;  %v1412_v13 = vld [vmem:[%s1811_s1] sm:$0xff]   ;;  %p1220_p10 = scmp.ne.s32.totalorder %s1471_s15, 1 }
  0x24   : > { %1274 = vmatprep.subr.bf16.mxu0 %v1482_v5  ;;  %v1213_v17 = vld [vmem:[%s1812_s2] ss:$0 sm:$0xff]  ;;  %s1486_s23 = smov (!%p1220_p10), 32   ;;  %s1487_s29 = smov (!%p1220_p10), 36  }
  0x25   : > { %v553_v9 = vadd.s32 %v552_v8, %v551_v7 }
  0x27   : > { %1275 = vmatpush3.bf16.msra.mxu0 %v1410_v6  ;;  %vm554_vm1 = vcmp.lt.s32.totalorder %v553_v9, 12  ;;  %v653_v39 = vld [vmem:[#allocation2] sm:$0x3] }
  0x28   : > { %1276 = vmatprep.subr.bf16.mxu0 %v1482_v5  ;;  %vm557_vm2 = vmpackc.low %vm554_vm1, %vm554_vm1 }
  0x29   : > { %v558_v14 = vsel %vm557_vm2, %v547_v11, 0  ;;  %v559_v15 = vsel %vm557_vm2, %v548_v12, 0 }
  0x2a   : > { %v1214_v16 = vcombine.low %v558_v14, %v559_v15 }
  0x2b   : > { %1277 = vmatpush3.bf16.msra.mxu0 %v1411_v10 }
  0x2c   : > { %1278 = vmatprep.subr.bf16.mxu0 %v1482_v5 }
  0x2f   : > { %1279 = vmatpush3.bf16.msra.mxu0 %v1412_v13 }
  0x32   : > { %1281 = vmatmul.mubr.msk.bf16.vlgmr.msra.gmra.mxu0 %vm604_vm3, %v1214_v16 }
  0xf2   : > { %v642_v18 = vpop.f32.mrf.mxu0 }
  0xf3   : > { %v643_v19 = vadd.f32 %v1213_v17, %v642_v18 }
  0xf4   : > { %v1282_v20 = vpop.f32.mrf.mxu0 }
  0xf5   : > { %v649_v21 = vmax.f32 %v643_v19, 0.0 }
  0xf6   : > { %v645_v22 = vpop.f32.mrf.mxu0 }
  0xf7   : > { %v651_v23 = vsel %vm554_vm1, %v649_v21, 0.0  ;;  %v646_v24 = vadd.f32 %v1213_v17, %v645_v22 }
  0xf8   : > { %v654_v25 = vrot.slane %v651_v23, 4  ;;  %v1283_v26 = vpop.f32.mrf.mxu0 }
  0xf9   : > { %v650_v27 = vmax.f32 %v646_v24, 0.0 }
  0xfa   : > { %v655_v28 = vadd.f32 %v654_v25, %v651_v23 }
  0xfb   : > { %v652_v29 = vsel %vm554_vm1, %v650_v27, 0.0 }
  0xfc   : > { %v656_v30 = vrot.slane %v655_v28, 2  ;;  %v660_v31 = vrot.slane %v652_v29, 4 }
  0xfe   : > { %v657_v32 = vadd.f32 %v656_v30, %v655_v28  ;;  %v661_v33 = vadd.f32 %v660_v31, %v652_v29 }
 0x100   : > { %v662_v34 = vrot.slane %v661_v33, 2  ;;  %v658_v35 = vrot.slane %v657_v32, 1 }
 0x102   : > { %v663_v36 = vadd.f32 %v662_v34, %v661_v33  ;;  %v659_v38 = vadd.f32 %v658_v35, %v657_v32 }
 0x104   : > { %v664_v37 = vrot.slane %v663_v36, 1 }
 0x106   : > { %v665_v40 = vadd.f32 %v664_v37, %v663_v36 }
 0x107   : > { %676 = sbr.rel (%p1220_p10) target bundleno = 1018 (0x3fa), region = 125 }
 0x108   : > { %v669_v41 = vsel %vm668_vm4, %v665_v40, %v659_v38 }
 0x109   : > { %v671_v42 = vadd.f32 %v669_v41, %v653_v39 }
 0x10b   : > { %672 = vst [vmem:[#allocation2] sm:$0x3] %v671_v42 }
 0x10c   : > { %v694_v43 = vld [vmem:[%s1813_s3 + $0x78] sm:$0xff]  ;;  %v1484_v44 = vmov 0.0   ;;  %v693_v45 = vld [vmem:[%s1813_s3 + $0x70] sm:$0xff]  ;;  %vm1485_vm5 = vmmov 0   ;;  %v692_v46 = vld [vmem:[%s1813_s3 + $0x68] sm:$0xff]  ;;  %vm782_vm6 = vcmask 130048  }
 0x10d   : > { %1284 = vmatprep.subr.mxu0 %v1484_v44  ;;  %1319 = vmatprep.subr.mxu1 %v1484_v44  ;;  %v774_v47 = vld [vmem:[%s1816_s6 + $0x8] sm:$0xff]  ;;  %v691_v48 = vld [vmem:[%s1813_s3 + $0x60] sm:$0xff]  ;;  %v690_v51 = vld [vmem:[%s1813_s3 + $0x58] sm:$0xff]  ;;  %vm869_vm7 = vcmask 261120   ;;  %vm1116_vm8 = vcmask 293888   ;;  %vm1118_vm9 = vcmask 359424  }
 0x10e   : > { %1285 = vmatpush3.msra.mxu0 %v694_v43  ;;  %1323 = vmatprep.mubr.msk.f32.mxu1 %vm1485_vm5, %v1484_v44  ;;  %v773_v49 = vld [vmem:[%s1816_s6] sm:$0xff]  ;;  %v689_v52 = vld [vmem:[%s1813_s3 + $0x50] sm:$0xff]  ;;  %v688_v53 = vld [vmem:[%s1813_s3 + $0x48] sm:$0xff] }
 0x10f   : > { %1286 = vmatprep.subr.mxu0 %v1484_v44  ;;  %1316 = vmatprep.mubr.msk.f32.mxu0 %vm1485_vm5, %v1484_v44  ;;  %v772_v50 = vld [vmem:[%s1815_s5] sm:$0x3]  ;;  %v686_v55 = vld [vmem:[%s1813_s3 + $0x38] sm:$0xff]  ;;  %v685_v56 = vld [vmem:[%s1813_s3 + $0x30] sm:$0xff] }
 0x110   : > { %1287 = vmatpush3.msra.mxu0 %v693_v45  ;;  %1320 = vmatpush3.msra.mxu1 %v774_v47  ;;  %v687_v54 = vld [vmem:[%s1813_s3 + $0x40] sm:$0xff]  ;;  %v684_v57 = vld [vmem:[%s1813_s3 + $0x28] sm:$0xff]  ;;  %v682_v59 = vld [vmem:[%s1813_s3 + $0x18] sm:$0xff] }
 0x111   : > { %1288 = vmatprep.subr.mxu0 %v1484_v44  ;;  %1321 = vmatprep.subr.mxu1 %v1484_v44  ;;  %v683_v58 = vld [vmem:[%s1813_s3 + $0x20] sm:$0xff]  ;;  %v681_v60 = vld [vmem:[%s1813_s3 + $0x10] sm:$0xff]  ;;  %v680_v62 = vld [vmem:[%s1813_s3 + $0x8] sm:$0xff] }
 0x112   : > { %1289 = vmatpush3.msra.mxu0 %v692_v46  ;;  %1322 = vmatpush3.msra.mxu1 %v773_v49  ;;  %v677_v61 = vld [vmem:[#allocation2] sm:$0x3]  ;;  %v861_v1 = vld [vmem:[%s1818_s8 + $0x18] sm:$0xff]  ;;  %v860_v2 = vld [vmem:[%s1818_s8 + $0x10] sm:$0xff] }
 0x113   : > { %1290 = vmatprep.subr.mxu0 %v1484_v44  ;;  %1324 = vmatmul.mubr.msk.f32.vlgmr.msra.gmra.mxu1 %vm782_vm6, %v772_v50  ;;  %v679_v63 = vld [vmem:[%s1813_s3] sm:$0xff]  ;;  %v678_v0 = vmul.f32 0.083333336, %v677_v61  ;;  %v859_v3 = vld [vmem:[%s1818_s8 + $0x8] sm:$0xff]  ;;  %v1029_v22 = vld [vmem:[%s1822_s12 + $0x18] sm:$0xff] }
 0x114   : > { %1291 = vmatpush3.msra.mxu0 %v691_v48  ;;  %1326 = vmatprep.subr.mxu1 %v1484_v44  ;;  %v858_v4 = vld [vmem:[%s1818_s8] sm:$0xff]  ;;  %v945_v15 = vld [vmem:[%s1820_s10 + $0x8] sm:$0xff]  ;;  %v1028_v23 = vld [vmem:[%s1822_s12 + $0x10] sm:$0xff] }
 0x115   : > { %1292 = vmatprep.subr.mxu0 %v1484_v44  ;;  %1334 = vmatprep.mubr.msk.f32.mxu1 %vm1485_vm5, %v1484_v44  ;;  %v1222_v7 = vld [vmem:[%s1817_s7] ss:$0 sm:$0xff]  ;;  %v1027_v24 = vld [vmem:[%s1822_s12 + $0x8] sm:$0xff] }
 0x116   : > { %1293 = vmatpush3.msra.mxu0 %v690_v51  ;;  %1327 = vmatpush3.msra.mxu1 %v861_v1  ;;  %v1221_v8 = vld [vmem:[%s1814_s4] ss:$0 sm:$0xff] }
 0x117   : > { %1294 = vmatprep.subr.mxu0 %v1484_v44  ;;  %1328 = vmatprep.subr.mxu1 %v1484_v44  ;;  %v944_v16 = vld [vmem:[%s1820_s10] sm:$0xff] }
 0x118   : > { %1295 = vmatpush3.msra.mxu0 %v689_v52  ;;  %1329 = vmatpush3.msra.mxu1 %v860_v2  ;;  %v1224_v17 = vld [vmem:[%s1819_s9] ss:$0 sm:$0xff] }
 0x119   : > { %1296 = vmatprep.subr.mxu0 %v1484_v44  ;;  %1330 = vmatprep.subr.mxu1 %v1484_v44  ;;  %v1026_v25 = vld [vmem:[%s1822_s12] sm:$0xff] }
 0x11a   : > { %1297 = vmatpush3.msra.mxu0 %v688_v53  ;;  %1331 = vmatpush3.msra.mxu1 %v859_v3  ;;  %v1226_v26 = vld [vmem:[%s1821_s11] ss:$0 sm:$0xff] }
 0x11b   : > { %1298 = vmatprep.subr.mxu0 %v1484_v44  ;;  %1332 = vmatprep.subr.mxu1 %v1484_v44  ;;  %v1228_v30 = vld [vmem:[%s1823_s13] ss:$0 sm:$0xff] }
 0x11c   : > { %1299 = vmatpush3.msra.mxu0 %v687_v54  ;;  %1333 = vmatpush3.msra.mxu1 %v858_v4 }
 0x11d   : > { %1300 = vmatprep.subr.mxu0 %v1484_v44  ;;  %1337 = vmatprep.subr.mxu1 %v1484_v44 }
 0x11e   : > { %1301 = vmatpush3.msra.mxu0 %v686_v55 }
 0x11f   : > { %1302 = vmatprep.subr.mxu0 %v1484_v44 }
 0x120   : > { %1303 = vmatpush3.msra.mxu0 %v685_v56 }
 0x121   : > { %1304 = vmatprep.subr.mxu0 %v1484_v44 }
 0x122   : > { %1305 = vmatpush3.msra.mxu0 %v684_v57 }
 0x123   : > { %1306 = vmatprep.subr.mxu0 %v1484_v44 }
 0x124   : > { %1307 = vmatpush3.msra.mxu0 %v683_v58 }
 0x125   : > { %1308 = vmatprep.subr.mxu0 %v1484_v44 }
 0x126   : > { %1309 = vmatpush3.msra.mxu0 %v682_v59 }
 0x127   : > { %1310 = vmatprep.subr.mxu0 %v1484_v44 }
 0x128   : > { %1311 = vmatpush3.msra.mxu0 %v681_v60 }
 0x129   : > { %1312 = vmatprep.subr.mxu0 %v1484_v44 }
 0x12a   : > { %1313 = vmatpush3.msra.mxu0 %v680_v62 }
 0x12b   : > { %1314 = vmatprep.subr.mxu0 %v1484_v44 }
 0x12c   : > { %1315 = vmatpush3.msra.mxu0 %v679_v63 }
 0x12d   : > { %1317 = vmatmul.mubr.f32.vlgmr.msra.gmra.mxu0 %v678_v0 }
 0x1d3   : > { %v852_v5 = vpop.f32.mrf.mxu1 }
 0x1d4   : > { %v853_v9 = vadd.f32 %v1222_v7, %v852_v5 }
 0x1d5   : > { %v1325_v6 = vpop.f32.mrf.mxu1 }
 0x1ed   : > { %v768_v10 = vpop.f32.mrf.mxu0 }
 0x1ee   : > { %v769_v11 = vadd.f32 %v1221_v8, %v768_v10 }
 0x1ef   : > { %v1318_v12 = vpop.f32.mrf.mxu0 }
 0x1f0   : > { %v856_v13 = vmul.f32 %v853_v9, %v769_v11 }
 0x1f2   : > { %v857_v14 = vadd.f32 %v856_v13, %v769_v11 }
 0x1f4   : > { %1335 = vmatmul.mubr.msk.f32.vlgmr.msra.gmra.mxu1 %vm869_vm7, %v857_v14 }
 0x1f5   : > { %1341 = vmatprep.mubr.msk.f32.mxu1 %vm1485_vm5, %v1484_v44  ;;  %1338 = vmatpush3.msra.mxu1 %v945_v15 }
 0x1f6   : > { %1339 = vmatprep.subr.mxu1 %v1484_v44 }
 0x1f7   : > { %1340 = vmatpush3.msra.mxu1 %v944_v16 }
 0x1f8   : > { %1344 = vmatprep.subr.mxu1 %v1484_v44 }
 0x2b4   : > { %v939_v18 = vpop.f32.mrf.mxu1 }
 0x2b5   : > { %v940_v19 = vadd.f32 %v1224_v17, %v939_v18 }
 0x2b6   : > { %v1336_v20 = vpop.f32.mrf.mxu1 }
 0x2b7   : > { %v943_v21 = vmax.f32 %v940_v19, 0.0 }
 0x2b9   : > { %1342 = vmatmul.mubr.msk.f32.vlgmr.msra.gmra.mxu1 %vm782_vm6, %v943_v21 }
 0x2ba   : > { %1345 = vmatpush3.msra.mxu1 %v1029_v22  ;;  %1352 = vmatprep.mubr.msk.f32.mxu1 %vm1485_vm5, %v1484_v44 }
 0x2bb   : > { %1346 = vmatprep.subr.mxu1 %v1484_v44 }
 0x2bc   : > { %1347 = vmatpush3.msra.mxu1 %v1028_v23 }
 0x2bd   : > { %1348 = vmatprep.subr.mxu1 %v1484_v44 }
 0x2be   : > { %1349 = vmatpush3.msra.mxu1 %v1027_v24 }
 0x2bf   : > { %1350 = vmatprep.subr.mxu1 %v1484_v44 }
 0x2c0   : > { %1351 = vmatpush3.msra.mxu1 %v1026_v25 }
 0x2c1   : > { %1353 = vmatmul.mubr.msk.f32.vlgmr.msra.gmra.mxu1 %vm869_vm7, %v857_v14 }
 0x379   : > { %v1022_v27 = vpop.f32.mrf.mxu1 }
 0x37a   : > { %v1023_v28 = vadd.f32 %v1226_v26, %v1022_v27 }
 0x37b   : > { %v1343_v29 = vpop.f32.mrf.mxu1 }
 0x37c   : > { %1108 = vrot.lane.b32.xlu0 %v1023_v28, %s1486_s23 }
 0x381   : > { %v1103_v31 = vpop.f32.mrf.mxu1 }
 0x382   : > { %v1104_v32 = vadd.f32 %v1228_v30, %v1103_v31 }
 0x383   : > { %v1354_v33 = vpop.f32.mrf.mxu1 }
 0x384   : > { %1112 = vrot.lane.b32.xlu0 %v1104_v32, %s1487_s29 }
 0x3ee   : > { %v1109_v34 = vpop.permute.xlu0 %1108 }
 0x3ef   : > { %v1115_v35 = vsel %vm869_vm7, %v857_v14, %v1109_v34 }
 0x3f6   : > { %v1113_v36 = vpop.permute.xlu0 %1112 }
 0x3f7   : > { %v1117_v37 = vsel %vm1116_vm8, %v1115_v35, %v1113_v36 }
 0x3f8   : > { %v1119_v38 = vsel %vm1118_vm9, %v1117_v37, 0.0 }
 0x3f9   : > { %1120 = vst [vmem:[#allocation4] sm:$0x3] %v1119_v38 }
 0x3fa PF: > { %s1825_s15 = sadd.s32 4294967295, %s1479_s17   ;;  %s1488_s28 = smov [#allocation4]  }
 0x3fb   : > { %p1780_p11 = scmp.eq.s32.totalorder %s1825_s15, 1  ;;  %s1130_s20 = sshll.u32 %s1488_s28, 4  ;;  %s1131_s20 = int_to_ptr.vmem [resolvable:$true] %s1130_s20 }
 0x3fc   : > { %s1413_s21 = scalar_lea.vmem %s1131_s20, 32  ;;  %p1420_p1 = scmp.lt.s32.totalorder %s1131_s20, %s1131_s20 }
 0x3fd   : > { %p1414_p12 = scmp.ne.s32.totalorder %s1131_s20, %s1413_s21  ;;  %p1421_p2 = scmp.lt.s32.totalorder %s1413_s21, %s1413_s21 }
 0x3ff   : > { %p1415_p13 = pnand %p1414_p12, %p1780_p11  ;;  %p1422_p3 = por %p1421_p2, %p1420_p1 }
 0x401   : > { %p1416_p0 = pneg %p1415_p13 }
 0x403   : > { %p1423_p4 = pnand %p1422_p3, %p1416_p0 }
 0x405   : > { %1426 = shalt.err (!%p1423_p4)
}
 0x406   : > { %1356 = dma.vmem_to_hbm [thread:$0]  (%p1780_p11), %s1131_s20, 32, %s1824_s14, [#allocation5]  }
 0x407   : > { %1458 = dma.done.wait (%p1780_p11), [#allocation5], 32  }
 0x408   : > { %1460 = vsyncadd (%p1780_p11), [#allocation5], 4294967264 }
 0x409 PF: > { %s25_s17 = sadd.s32 1, %s1479_s17   ;;  %s1827_s29 = smov %s1467_s30 }
 0x40a   : > { %p22_p5 = scmp.ge.s32.totalorder %s25_s17, 4   ;;  %s1828_s30 = smov %s1600_s22 }
 0x40b   : > { %s1829_s15 = smov %s1475_s16  ;;  %s1830_s16 = smov %s1832_s19 }
 0x40c   :  { %24 = sbr.rel (!%p22_p5) target bundleno = 3 (0x3), region = 161 }
 0x411   :  { %1143 = vsyncpa [#allocation5], 1 }
 0x412   :  { %1145 = vsyncpa [#allocation5 + $0x1], 1 }

</bundles_post_ra>
